<compile_context>
chip_gen: v7x
topology: tpu7x:2x2x1
jax: 0.10.0
libtpu: 0.0.40
codegen_flags: <defaults>
</compile_context>

<pallas_src>
import functools

import numpy as np
import jax
import jax.numpy as jnp
from jax import lax
from jax.experimental import pallas as pl
from jax.experimental.pallas import tpu as pltpu

# ----------------------------- configuration ------------------------------
IN_CHANNELS = 2            # real / imag channels fed to the encoder
STRIDE = 2
KERNEL_SZS = [3, 3]
LATENT_DIM = 16
HIDDEN_DIMS = [8, 16]
INPUT_SIZE = (16, 4)       # [N_rx, N_tx]  (small shapes)
PAD = 2
BN_EPS = 1e-5
BATCH = 2


def _compute_pre_latent():
    tmp = np.array(INPUT_SIZE, dtype=np.float64)
    pre = None
    for i in range(len(HIDDEN_DIMS)):
        tmp = np.floor((tmp + 2 * PAD - np.array(KERNEL_SZS[i])) / STRIDE + 1).astype(int)
        pre = tmp
    return pre


PRE_LATENT = _compute_pre_latent()                       # -> [6, 3]


def _compute_pre_out():
    pre = PRE_LATENT.copy()
    ker_rev = list(reversed(KERNEL_SZS))
    for i in range(len(HIDDEN_DIMS)):
        pre = (pre - 1) * STRIDE - 2 * PAD + np.array(ker_rev[i])
    return int(np.prod(pre))


PRE_OUT = _compute_pre_out()                             # -> 45
M_TOT = int(np.prod(INPUT_SIZE))                         # -> 64


def dft_matrix(n):
    """Unitary DFT matrix (the torch reference relies on an external dft_matrix)."""
    idx = np.arange(n)
    return (np.exp(-2j * np.pi * np.outer(idx, idx) / n) / np.sqrt(n)).astype(np.complex64)


def hdot(a, b):
    return jnp.dot(a, b, precision=lax.Precision.HIGHEST)


# ---------------- init-time conv -> dense-GEMM lowering (plain JAX) ----------------
def conv_dense(w, hin, win, stride, pad):
    """Dense matrix D s.t. conv2d(x)_flat = x_flat @ D (C,H,W flatten order)."""
    cout, cin, k, _ = w.shape
    n = cin * hin * win
    eye = jnp.eye(n, dtype=jnp.float32).reshape(n, cin, hin, win)
    y = lax.conv_general_dilated(
        eye, w.astype(jnp.float32), window_strides=(stride, stride),
        padding=[(pad, pad), (pad, pad)],
        dimension_numbers=('NCHW', 'OIHW', 'NCHW'),
        precision=lax.Precision.HIGHEST)
    ho, wo = int(y.shape[2]), int(y.shape[3])
    return y.reshape(n, cout * ho * wo), (ho, wo)


def conv_transpose_dense(w, hin, win, stride, pad):
    """PyTorch ConvTranspose2d(w[Cin,Cout,k,k]) == adjoint of Conv2d with the
    same weight tensor mapping [Cout,Ho,Wo] -> [Cin,hin,win]."""
    cin_t, cout_t, k, _ = w.shape
    ho = (hin - 1) * stride - 2 * pad + k
    wo = (win - 1) * stride - 2 * pad + k
    D, (h_chk, w_chk) = conv_dense(w, ho, wo, stride, pad)  # [cout_t*ho*wo, cin_t*hin*win]
    assert (h_chk, w_chk) == (hin, win)
    return D.T, (ho, wo)


def build_front_matrix(embed_w):
    """Dense matrix mapping [dt_r | dt_i] (len 2M, data_trans order) directly to the
    flattened output of the embed 1x1 conv (enc_in reshape/transpose folded in)."""
    nrx, ntx = INPUT_SIZE
    m = M_TOT
    w = embed_w.astype(jnp.float32)

    def one(v):
        dr = v[:m].reshape(ntx, nrx).T       # view(-1,1,Ntx,Nrx).transpose(-1,-2)
        di = v[m:].reshape(ntx, nrx).T
        enc = jnp.stack([dr, di], axis=0)[None]      # [1, 2, Nrx, Ntx]
        y = lax.conv_general_dilated(enc, w, (1, 1), [(0, 0), (0, 0)],
                                     dimension_numbers=('NCHW', 'OIHW', 'NCHW'),
                                     precision=lax.Precision.HIGHEST)
        return y.reshape(-1)

    return jax.vmap(one)(jnp.eye(2 * m, dtype=jnp.float32))


def complex_pack(wr, wi):
    """Block-real packing of a complex right-multiplier W = wr + i*wi:
       [xr | xi] @ pack(wr, wi) = [real | imag] of (xr + i*xi) @ W."""
    top = jnp.concatenate([wr, wi], axis=1)
    bot = jnp.concatenate([-wi, wr], axis=1)
    return jnp.concatenate([top, bot], axis=0)


# ------------------------------ parameters ---------------------------------
def init_params(key):
    std = 0.05
    keys = iter(jax.random.split(key, 64))

    def nrm(shape):
        return std * jax.random.normal(next(keys), shape, dtype=jnp.float32)

    params = {}
    h0 = HIDDEN_DIMS[0]
    params['embed_w'] = nrm((h0, IN_CHANNELS, 1, 1))
    params['embed_b'] = nrm((h0,))

    enc_blocks, cin = [], h0
    for i, h in enumerate(HIDDEN_DIMS):
        k = KERNEL_SZS[i]
        gamma, beta = nrm((h,)), nrm((h,))
        enc_blocks.append(dict(w=nrm((h, cin, k, k)), b=nrm((h,)),
                               bn_scale=gamma / jnp.sqrt(1.0 + BN_EPS),
                               bn_shift=beta))
        cin = h
    params['enc_blocks'] = enc_blocks

    flat = int(np.prod(PRE_LATENT)) * HIDDEN_DIMS[-1]
    params['fc_w'] = nrm((2 * LATENT_DIM, flat))
    params['fc_b'] = nrm((2 * LATENT_DIM,))

    hid_rev = list(reversed(HIDDEN_DIMS))
    ker_rev = list(reversed(KERNEL_SZS))
    params['dec_in_w'] = nrm((hid_rev[0] * int(np.prod(PRE_LATENT)), LATENT_DIM))
    params['dec_in_b'] = nrm((hid_rev[0] * int(np.prod(PRE_LATENT)),))

    dec_blocks = []
    for i in range(len(hid_rev)):
        cin_d = hid_rev[i]
        cout_d = hid_rev[i + 1] if i < len(hid_rev) - 1 else 3
        k = ker_rev[i]
        gamma, beta = nrm((cout_d,)), nrm((cout_d,))
        dec_blocks.append(dict(w=nrm((cin_d, cout_d, k, k)), b=nrm((cout_d,)),
                               bn_scale=gamma / jnp.sqrt(1.0 + BN_EPS),
                               bn_shift=beta))
    params['dec_blocks'] = dec_blocks

    params['final_w'] = nrm((3 * M_TOT, 3 * PRE_OUT))
    params['final_b'] = nrm((3 * M_TOT,))
    return params


# ---------------- fold everything into fused-kernel operands (init time) ----------------
def build_operands(params, Qr, Qi):
    nrx, ntx = INPUT_SIZE
    m = M_TOT

    # block-real packed Q matrices (128 x 128, lane dense)
    QT_pack = complex_pack(Qr.T, Qi.T)              # right-multiply by Q.T
    Qc_pack = complex_pack(Qr, -Qi)                 # right-multiply by conj(Q)
    Q_pack = complex_pack(Qr, Qi)                   # right-multiply by Q
    QH_pack = jnp.concatenate([Qr.T, -Qi.T], axis=1)  # rows of Q^H (real | imag), [M, 2M]

    # encoder front: enc_in permutation + embed 1x1 conv
    W_front = build_front_matrix(params['embed_w'])            # [2M, h0*Nrx*Ntx]
    b_front = jnp.repeat(params['embed_b'], nrx * ntx)         # [h0*Nrx*Ntx]

    # encoder conv blocks -> dense GEMMs (BN scale folded into W, bias into shift)
    hin, win = nrx, ntx
    enc_mats = []
    for blk in params['enc_blocks']:
        D, (ho, wo) = conv_dense(blk['w'], hin, win, STRIDE, PAD)
        sp = ho * wo
        scale = jnp.repeat(blk['bn_scale'], sp)
        shift = jnp.repeat(blk['bn_shift'], sp)
        bias = jnp.repeat(blk['b'], sp)
        enc_mats.append((D * scale[None, :], bias * scale + shift))
        hin, win = ho, wo

    W_e1, sh_e1 = enc_mats[0]
    W_A = hdot(W_front, W_e1)                       # embed folded into conv1 GEMM
    sh_A = hdot(b_front, W_e1) + sh_e1
    W_e2, sh_e2 = enc_mats[1]

    W_fc = params['fc_w'].T                         # [288, 32]
    b_fc = params['fc_b']

    # decoder: decoder_input linear folded into first ConvTranspose GEMM
    hin, win = int(PRE_LATENT[0]), int(PRE_LATENT[1])
    dec_mats = []
    for blk in params['dec_blocks']:
        D, (ho, wo) = conv_transpose_dense(blk['w'], hin, win, STRIDE, PAD)
        sp = ho * wo
        scale = jnp.repeat(blk['bn_scale'], sp)
        shift = jnp.repeat(blk['bn_shift'], sp)
        bias = jnp.repeat(blk['b'], sp)
        dec_mats.append((D * scale[None, :], bias * scale + shift))
        hin, win = ho, wo

    W_d1, sh_d1 = dec_mats[0]
    W_di = params['dec_in_w'].T                     # [latent, 288]
    b_di = params['dec_in_b']
    W_B = hdot(W_di, W_d1)
    sh_B = hdot(b_di, W_d1) + sh_d1
    W_d2, sh_d2 = dec_mats[1]

    # final linear split into the (mu_out_r | mu_out_i) head and the log_prec head
    W_fin = params['final_w'].T                     # [135, 192]
    b_fin = params['final_b']
    W_fa, b_fa = W_fin[:, :2 * m], b_fin[:2 * m]
    W_fb, b_fb = W_fin[:, 2 * m:], b_fin[2 * m:]

    def row(v):
        return v.reshape(1, -1)

    ops = (QT_pack, Qc_pack, Q_pack, QH_pack,
           W_A, row(sh_A), W_e2, row(sh_e2), W_fc, row(b_fc),
           W_B, row(sh_B), W_d2, row(sh_d2),
           W_fa, row(b_fa), W_fb, row(b_fb))
    return tuple(jnp.asarray(o, jnp.float32) for o in ops)


# ------------------------------ fused Pallas kernel ------------------------------
def _fused_forward_kernel(x_ref, qt_ref, qc_ref, qp_ref, qh_ref,
                          wA_ref, shA_ref, we2_ref, sh2_ref, wfc_ref, bfc_ref,
                          wB_ref, shB_ref, wd2_ref, shd2_ref,
                          wfa_ref, bfa_ref, wfb_ref, bfb_ref,
                          dt_ref, ml_ref, mo_ref, lp_ref, mu_ref, cov_ref):
    dot = functools.partial(jnp.dot, preferred_element_type=jnp.float32)
    B = x_ref.shape[0]

    # data_trans = data_flat @ Q.T  (block-packed complex matmul: one MXU GEMM)
    dt = dot(x_ref[...], qt_ref[...])
    dt_ref[...] = dt

    # encoder: (embed 1x1 conv + conv1 + BN + ReLU) folded into one GEMM, then conv2
    h = jnp.maximum(dot(dt, wA_ref[...]) + shA_ref[...], 0.0)
    h = jnp.maximum(dot(h, we2_ref[...]) + sh2_ref[...], 0.0)
    ml = dot(h, wfc_ref[...]) + bfc_ref[...]
    ml_ref[...] = ml                                 # [mu_enc | log_std_enc]

    # eval mode: z_0 = mu_enc
    z = ml[:, :LATENT_DIM]

    # decoder: (decoder_input linear + deconv1 + BN + ReLU) folded, then deconv2
    g = jnp.maximum(dot(z, wB_ref[...]) + shB_ref[...], 0.0)
    g = jnp.maximum(dot(g, wd2_ref[...]) + shd2_ref[...], 0.0)

    # final linear, split heads: [mu_out_r | mu_out_i] and log_prec
    mo = dot(g, wfa_ref[...]) + bfa_ref[...]
    lp = dot(g, wfb_ref[...]) + bfb_ref[...]
    mo_ref[...] = mo
    lp_ref[...] = lp

    # mu = mu_out @ conj(Q)  (block-packed)
    mu_ref[...] = dot(mo, qc_ref[...])

    # C_b = Q^H diag(exp(-log_prec_b)) Q, batched over B into one [B*M,2M]x[2M,2M] GEMM
    # TODO(synk): reference does not clamp log_prec; exp(-log_prec) kept unclamped.
    d = jnp.exp(-lp)                                 # [B, M]
    dd = jnp.concatenate([d, d], axis=1)             # [B, 2M]
    qh = qh_ref[...]                                 # [M, 2M]
    lhs = jnp.concatenate([qh * dd[b:b + 1, :] for b in range(B)], axis=0)  # [B*M, 2M]
    cov_ref[...] = dot(lhs, qp_ref[...])             # [B*M, 2M] = [Cr | Ci]


def _full_spec(shape):
    nd = len(shape)
    return pl.BlockSpec(tuple(shape), lambda i, _nd=nd: (0,) * _nd)


def fused_forward(operands, data_r, data_i):
    """VAECircCovMIMO.forward with cond_as_input=False, train=False (one pallas_call)."""
    B = data_r.shape[0]
    m = M_TOT

    # data.transpose(-1,-2).flatten(1), real/imag packed side by side
    xr = data_r.transpose(0, 2, 1).reshape(B, m)
    xi = data_i.transpose(0, 2, 1).reshape(B, m)
    xpack = jnp.concatenate([xr, xi], axis=1).astype(jnp.float32)

    inputs = (xpack,) + tuple(operands)
    out_shape = (
        jax.ShapeDtypeStruct((B, 2 * m), jnp.float32),            # data_trans (r|i)
        jax.ShapeDtypeStruct((B, 2 * LATENT_DIM), jnp.float32),   # mu_enc | log_std_enc
        jax.ShapeDtypeStruct((B, 2 * m), jnp.float32),            # mu_out (r|i)
        jax.ShapeDtypeStruct((B, m), jnp.float32),                # log_prec
        jax.ShapeDtypeStruct((B, 2 * m), jnp.float32),            # mu (r|i)
        jax.ShapeDtypeStruct((B * m, 2 * m), jnp.float32),        # C (r|i), batch-stacked
    )

    dt, ml, mo, lp, mu, cov = pl.pallas_call(
        _fused_forward_kernel,
        out_shape=out_shape,
        grid=(1,),
        in_specs=[_full_spec(a.shape) for a in inputs],
        out_specs=tuple(_full_spec(s.shape) for s in out_shape),
        compiler_params=pltpu.CompilerParams(dimension_semantics=("arbitrary",)),
    )(*inputs)

    data_trans = dt[:, :m] + 1j * dt[:, m:]
    mu_enc, log_std_enc = ml[:, :LATENT_DIM], ml[:, LATENT_DIM:]
    mu_out = mo[:, :m] + 1j * mo[:, m:]
    mu_c = mu[:, :m] + 1j * mu[:, m:]
    cov3 = cov.reshape(B, m, 2 * m)
    C = cov3[:, :, :m] + 1j * cov3[:, :, m:]
    data = data_r + 1j * data_i
    z_0 = mu_enc
    return dict(mu_out=mu_out, data=data, data_trans=data_trans, log_prec=lp,
                mu_enc=mu_enc, log_std_enc=log_std_enc, z_0=z_0, z=z_0,
                jacobians=jnp.float32(0.0), mu=mu_c, C=C)


# ------------------------------ pure-JAX reference ------------------------------
def reference_outputs(operands, data_r, data_i):
    """Same math chain in plain JAX (validates the Pallas kernel packing / logic)."""
    (QT_pack, Qc_pack, Q_pack, QH_pack, W_A, sh_A, W_e2, sh_e2, W_fc, b_fc,
     W_B, sh_B, W_d2, sh_d2, W_fa, b_fa, W_fb, b_fb) = operands
    B = data_r.shape[0]
    m = M_TOT
    xr = data_r.transpose(0, 2, 1).reshape(B, m)
    xi = data_i.transpose(0, 2, 1).reshape(B, m)
    x = jnp.concatenate([xr, xi], axis=1).astype(jnp.float32)
    dt = hdot(x, QT_pack)
    h = jnp.maximum(hdot(dt, W_A) + sh_A, 0.0)
    h = jnp.maximum(hdot(h, W_e2) + sh_e2, 0.0)
    ml = hdot(h, W_fc) + b_fc
    z = ml[:, :LATENT_DIM]
    g = jnp.maximum(hdot(z, W_B) + sh_B, 0.0)
    g = jnp.maximum(hdot(g, W_d2) + sh_d2, 0.0)
    mo = hdot(g, W_fa) + b_fa
    lp = hdot(g, W_fb) + b_fb
    mu = hdot(mo, Qc_pack)
    d = jnp.exp(-lp)
    dd = jnp.concatenate([d, d], axis=1)
    lhs = jnp.concatenate([QH_pack * dd[b:b + 1, :] for b in range(B)], axis=0)
    cov = hdot(lhs, Q_pack).reshape(B, m, 2 * m)
    return dict(
        data_trans=dt[:, :m] + 1j * dt[:, m:],
        mu_enc=ml[:, :LATENT_DIM], log_std_enc=ml[:, LATENT_DIM:],
        mu_out=mo[:, :m] + 1j * mo[:, m:],
        log_prec=lp,
        mu=mu[:, :m] + 1j * mu[:, m:],
        C=cov[:, :, :m] + 1j * cov[:, :, m:])


# --------------------------------- main -------------------------------------
if __name__ == "__main__":
    key = jax.random.PRNGKey(0)
    kr, ki = jax.random.split(key)
    data_r = jax.random.normal(kr, (BATCH, INPUT_SIZE[0], INPUT_SIZE[1]), jnp.float32)
    data_i = jax.random.normal(ki, (BATCH, INPUT_SIZE[0], INPUT_SIZE[1]), jnp.float32)

    params = init_params(jax.random.PRNGKey(42))

    Qc = np.kron(dft_matrix(INPUT_SIZE[1]), dft_matrix(INPUT_SIZE[0]))
    Qr = jnp.asarray(Qc.real, jnp.float32)
    Qi = jnp.asarray(Qc.imag, jnp.float32)

    # sanity check of the init-time conv -> dense-GEMM lowering
    blk0 = params['enc_blocks'][0]
    xt = jax.random.normal(jax.random.PRNGKey(1),
                           (1, HIDDEN_DIMS[0], INPUT_SIZE[0], INPUT_SIZE[1]), jnp.float32)
    D0, _ = conv_dense(blk0['w'], INPUT_SIZE[0], INPUT_SIZE[1], STRIDE, PAD)
    y_direct = lax.conv_general_dilated(xt, blk0['w'], (STRIDE, STRIDE),
                                        [(PAD, PAD), (PAD, PAD)],
                                        dimension_numbers=('NCHW', 'OIHW', 'NCHW'),
                                        precision=lax.Precision.HIGHEST)
    np.testing.assert_allclose(np.asarray(hdot(xt.reshape(1, -1), D0)),
                               np.asarray(y_direct.reshape(1, -1)),
                               rtol=1e-3, atol=1e-3)

    operands = build_operands(params, Qr, Qi)

    fwd = jax.jit(fused_forward)
    outs = fwd(operands, data_r, data_i)
    outs = jax.block_until_ready(outs)

    # correctness: fused Pallas kernel vs plain-JAX reference of the same math
    ref = reference_outputs(operands, data_r, data_i)
    for name in ("data_trans", "mu_enc", "log_std_enc", "mu_out", "log_prec", "mu", "C"):
        np.testing.assert_allclose(np.asarray(outs[name]), np.asarray(ref[name]),
                                   rtol=1e-2, atol=1e-2, err_msg=f"mismatch in {name}")

    # finiteness checks
    for name in ("mu_out", "log_prec", "mu_enc", "log_std_enc", "mu", "C", "data_trans"):
        v = outs[name]
        v = jnp.abs(v) if jnp.iscomplexobj(v) else v
        assert bool(jnp.all(jnp.isfinite(v))), f"non-finite output in {name}"

    print("KERNEL_OK")
</pallas_src>

<mosaic_0001>
module attributes {stable_mosaic.version = 11 : i64} {
  func.func @_fused_forward_kernel(%arg0: i32, %arg1: memref<2x128xf32, #tpu.memory_space<vmem>>, %arg2: memref<128x128xf32, #tpu.memory_space<vmem>>, %arg3: memref<128x128xf32, #tpu.memory_space<vmem>>, %arg4: memref<128x128xf32, #tpu.memory_space<vmem>>, %arg5: memref<64x128xf32, #tpu.memory_space<vmem>>, %arg6: memref<128x216xf32, #tpu.memory_space<vmem>>, %arg7: memref<1x216xf32, #tpu.memory_space<vmem>>, %arg8: memref<216x288xf32, #tpu.memory_space<vmem>>, %arg9: memref<1x288xf32, #tpu.memory_space<vmem>>, %arg10: memref<288x32xf32, #tpu.memory_space<vmem>>, %arg11: memref<1x32xf32, #tpu.memory_space<vmem>>, %arg12: memref<16x216xf32, #tpu.memory_space<vmem>>, %arg13: memref<1x216xf32, #tpu.memory_space<vmem>>, %arg14: memref<216x135xf32, #tpu.memory_space<vmem>>, %arg15: memref<1x135xf32, #tpu.memory_space<vmem>>, %arg16: memref<135x128xf32, #tpu.memory_space<vmem>>, %arg17: memref<1x128xf32, #tpu.memory_space<vmem>>, %arg18: memref<135x64xf32, #tpu.memory_space<vmem>>, %arg19: memref<1x64xf32, #tpu.memory_space<vmem>>, %arg20: memref<2x128xf32, #tpu.memory_space<vmem>>, %arg21: memref<2x32xf32, #tpu.memory_space<vmem>>, %arg22: memref<2x128xf32, #tpu.memory_space<vmem>>, %arg23: memref<2x64xf32, #tpu.memory_space<vmem>>, %arg24: memref<2x128xf32, #tpu.memory_space<vmem>>, %arg25: memref<128x128xf32, #tpu.memory_space<vmem>>) attributes {dimension_semantics = [#tpu.dimension_semantics<arbitrary>], iteration_bounds = array<i64: 1>, scalar_prefetch = 0 : i64, scratch_operands = 0 : i64, tpu.core_type = #tpu.core_type<tc>, window_params = [{pipeline_mode = #tpu.pipeline_mode<synchronous>, transform_indices = @transform_0, window_bounds = array<i64: 2, 128>}, {pipeline_mode = #tpu.pipeline_mode<synchronous>, transform_indices = @transform_1, window_bounds = array<i64: 128, 128>}, {pipeline_mode = #tpu.pipeline_mode<synchronous>, transform_indices = @transform_2, window_bounds = array<i64: 128, 128>}, {pipeline_mode = #tpu.pipeline_mode<synchronous>, transform_indices = @transform_3, window_bounds = array<i64: 128, 128>}, {pipeline_mode = #tpu.pipeline_mode<synchronous>, transform_indices = @transform_4, window_bounds = array<i64: 64, 128>}, {pipeline_mode = #tpu.pipeline_mode<synchronous>, transform_indices = @transform_5, window_bounds = array<i64: 128, 216>}, {pipeline_mode = #tpu.pipeline_mode<synchronous>, transform_indices = @transform_6, window_bounds = array<i64: 1, 216>}, {pipeline_mode = #tpu.pipeline_mode<synchronous>, transform_indices = @transform_7, window_bounds = array<i64: 216, 288>}, {pipeline_mode = #tpu.pipeline_mode<synchronous>, transform_indices = @transform_8, window_bounds = array<i64: 1, 288>}, {pipeline_mode = #tpu.pipeline_mode<synchronous>, transform_indices = @transform_9, window_bounds = array<i64: 288, 32>}, {pipeline_mode = #tpu.pipeline_mode<synchronous>, transform_indices = @transform_10, window_bounds = array<i64: 1, 32>}, {pipeline_mode = #tpu.pipeline_mode<synchronous>, transform_indices = @transform_11, window_bounds = array<i64: 16, 216>}, {pipeline_mode = #tpu.pipeline_mode<synchronous>, transform_indices = @transform_12, window_bounds = array<i64: 1, 216>}, {pipeline_mode = #tpu.pipeline_mode<synchronous>, transform_indices = @transform_13, window_bounds = array<i64: 216, 135>}, {pipeline_mode = #tpu.pipeline_mode<synchronous>, transform_indices = @transform_14, window_bounds = array<i64: 1, 135>}, {pipeline_mode = #tpu.pipeline_mode<synchronous>, transform_indices = @transform_15, window_bounds = array<i64: 135, 128>}, {pipeline_mode = #tpu.pipeline_mode<synchronous>, transform_indices = @transform_16, window_bounds = array<i64: 1, 128>}, {pipeline_mode = #tpu.pipeline_mode<synchronous>, transform_indices = @transform_17, window_bounds = array<i64: 135, 64>}, {pipeline_mode = #tpu.pipeline_mode<synchronous>, transform_indices = @transform_18, window_bounds = array<i64: 1, 64>}, {pipeline_mode = #tpu.pipeline_mode<synchronous>, transform_indices = @transform_19, window_bounds = array<i64: 2, 128>}, {pipeline_mode = #tpu.pipeline_mode<synchronous>, transform_indices = @transform_20, window_bounds = array<i64: 2, 32>}, {pipeline_mode = #tpu.pipeline_mode<synchronous>, transform_indices = @transform_21, window_bounds = array<i64: 2, 128>}, {pipeline_mode = #tpu.pipeline_mode<synchronous>, transform_indices = @transform_22, window_bounds = array<i64: 2, 64>}, {pipeline_mode = #tpu.pipeline_mode<synchronous>, transform_indices = @transform_23, window_bounds = array<i64: 2, 128>}, {pipeline_mode = #tpu.pipeline_mode<synchronous>, transform_indices = @transform_24, window_bounds = array<i64: 128, 128>}]} {
    %c0 = arith.constant 0 : index
    %c0_0 = arith.constant 0 : index
    %0 = vector.load %arg1[%c0, %c0_0] : memref<2x128xf32, #tpu.memory_space<vmem>>, vector<2x128xf32>
    %c0_1 = arith.constant 0 : index
    %c0_2 = arith.constant 0 : index
    %1 = vector.load %arg2[%c0_1, %c0_2] : memref<128x128xf32, #tpu.memory_space<vmem>>, vector<128x128xf32>
    %cst = arith.constant dense<0.000000e+00> : vector<2x128xf32>
    %2 = tpu.matmul %0, %1, %cst {dimension_numbers = #tpu.dot_dimension_numbers<[1], [0], [0], [1], [0, 0, 1, 1], [], []>} : vector<2x128xf32>, vector<128x128xf32>, vector<2x128xf32> -> vector<2x128xf32>
    %c0_3 = arith.constant 0 : index
    %c0_4 = arith.constant 0 : index
    %3 = vector.load %arg20[%c0_3, %c0_4] : memref<2x128xf32, #tpu.memory_space<vmem>>, vector<2x128xf32>
    tpu.vector_store %arg20[%c0_3, %c0_4], %2 {strides = array<i32>} : memref<2x128xf32, #tpu.memory_space<vmem>>, vector<2x128xf32>,
    %c0_5 = arith.constant 0 : index
    %c0_6 = arith.constant 0 : index
    %4 = vector.load %arg6[%c0_5, %c0_6] : memref<128x216xf32, #tpu.memory_space<vmem>>, vector<128x216xf32>
    %cst_7 = arith.constant dense<0.000000e+00> : vector<2x216xf32>
    %5 = tpu.matmul %2, %4, %cst_7 {dimension_numbers = #tpu.dot_dimension_numbers<[1], [0], [0], [1], [0, 0, 1, 1], [], []>} : vector<2x128xf32>, vector<128x216xf32>, vector<2x216xf32> -> vector<2x216xf32>
    %c0_8 = arith.constant 0 : index
    %c0_9 = arith.constant 0 : index
    %6 = vector.load %arg7[%c0_8, %c0_9] : memref<1x216xf32, #tpu.memory_space<vmem>>, vector<1x216xf32>
    %7 = vector.broadcast %6 : vector<1x216xf32> to vector<2x216xf32>
    %8 = arith.addf %5, %7 : vector<2x216xf32>
    %cst_10 = arith.constant 0.000000e+00 : f32
    %9 = vector.broadcast %cst_10 : f32 to vector<2x216xf32>
    %10 = arith.maximumf %8, %9 : vector<2x216xf32>
    %c0_11 = arith.constant 0 : index
    %c0_12 = arith.constant 0 : index
    %11 = vector.load %arg8[%c0_11, %c0_12] : memref<216x288xf32, #tpu.memory_space<vmem>>, vector<216x288xf32>
    %cst_13 = arith.constant dense<0.000000e+00> : vector<2x288xf32>
    %12 = tpu.matmul %10, %11, %cst_13 {dimension_numbers = #tpu.dot_dimension_numbers<[1], [0], [0], [1], [0, 0, 1, 1], [], []>} : vector<2x216xf32>, vector<216x288xf32>, vector<2x288xf32> -> vector<2x288xf32>
    %c0_14 = arith.constant 0 : index
    %c0_15 = arith.constant 0 : index
    %13 = vector.load %arg9[%c0_14, %c0_15] : memref<1x288xf32, #tpu.memory_space<vmem>>, vector<1x288xf32>
    %14 = vector.broadcast %13 : vector<1x288xf32> to vector<2x288xf32>
    %15 = arith.addf %12, %14 : vector<2x288xf32>
    %cst_16 = arith.constant 0.000000e+00 : f32
    %16 = vector.broadcast %cst_16 : f32 to vector<2x288xf32>
    %17 = arith.maximumf %15, %16 : vector<2x288xf32>
    %c0_17 = arith.constant 0 : index
    %c0_18 = arith.constant 0 : index
    %18 = vector.load %arg10[%c0_17, %c0_18] : memref<288x32xf32, #tpu.memory_space<vmem>>, vector<288x32xf32>
    %cst_19 = arith.constant dense<0.000000e+00> : vector<2x32xf32>
    %19 = tpu.matmul %17, %18, %cst_19 {dimension_numbers = #tpu.dot_dimension_numbers<[1], [0], [0], [1], [0, 0, 1, 1], [], []>} : vector<2x288xf32>, vector<288x32xf32>, vector<2x32xf32> -> vector<2x32xf32>
    %c0_20 = arith.constant 0 : index
    %c0_21 = arith.constant 0 : index
    %20 = vector.load %arg11[%c0_20, %c0_21] : memref<1x32xf32, #tpu.memory_space<vmem>>, vector<1x32xf32>
    %21 = vector.broadcast %20 : vector<1x32xf32> to vector<2x32xf32>
    %22 = arith.addf %19, %21 : vector<2x32xf32>
    %c0_22 = arith.constant 0 : index
    %c0_23 = arith.constant 0 : index
    %23 = vector.load %arg21[%c0_22, %c0_23] : memref<2x32xf32, #tpu.memory_space<vmem>>, vector<2x32xf32>
    tpu.vector_store %arg21[%c0_22, %c0_23], %22 {strides = array<i32>} : memref<2x32xf32, #tpu.memory_space<vmem>>, vector<2x32xf32>,
    %24 = vector.extract_strided_slice %22 {offsets = [0, 0], sizes = [2, 16], strides = [1, 1]} : vector<2x32xf32> to vector<2x16xf32>
    %c0_24 = arith.constant 0 : index
    %c0_25 = arith.constant 0 : index
    %25 = vector.load %arg12[%c0_24, %c0_25] : memref<16x216xf32, #tpu.memory_space<vmem>>, vector<16x216xf32>
    %cst_26 = arith.constant dense<0.000000e+00> : vector<2x216xf32>
    %26 = tpu.matmul %24, %25, %cst_26 {dimension_numbers = #tpu.dot_dimension_numbers<[1], [0], [0], [1], [0, 0, 1, 1], [], []>} : vector<2x16xf32>, vector<16x216xf32>, vector<2x216xf32> -> vector<2x216xf32>
    %c0_27 = arith.constant 0 : index
    %c0_28 = arith.constant 0 : index
    %27 = vector.load %arg13[%c0_27, %c0_28] : memref<1x216xf32, #tpu.memory_space<vmem>>, vector<1x216xf32>
    %28 = vector.broadcast %27 : vector<1x216xf32> to vector<2x216xf32>
    %29 = arith.addf %26, %28 : vector<2x216xf32>
    %cst_29 = arith.constant 0.000000e+00 : f32
    %30 = vector.broadcast %cst_29 : f32 to vector<2x216xf32>
    %31 = arith.maximumf %29, %30 : vector<2x216xf32>
    %c0_30 = arith.constant 0 : index
    %c0_31 = arith.constant 0 : index
    %32 = vector.load %arg14[%c0_30, %c0_31] : memref<216x135xf32, #tpu.memory_space<vmem>>, vector<216x135xf32>
    %cst_32 = arith.constant dense<0.000000e+00> : vector<2x135xf32>
    %33 = tpu.matmul %31, %32, %cst_32 {dimension_numbers = #tpu.dot_dimension_numbers<[1], [0], [0], [1], [0, 0, 1, 1], [], []>} : vector<2x216xf32>, vector<216x135xf32>, vector<2x135xf32> -> vector<2x135xf32>
    %c0_33 = arith.constant 0 : index
    %c0_34 = arith.constant 0 : index
    %34 = vector.load %arg15[%c0_33, %c0_34] : memref<1x135xf32, #tpu.memory_space<vmem>>, vector<1x135xf32>
    %35 = vector.broadcast %34 : vector<1x135xf32> to vector<2x135xf32>
    %36 = arith.addf %33, %35 : vector<2x135xf32>
    %cst_35 = arith.constant 0.000000e+00 : f32
    %37 = vector.broadcast %cst_35 : f32 to vector<2x135xf32>
    %38 = arith.maximumf %36, %37 : vector<2x135xf32>
    %c0_36 = arith.constant 0 : index
    %c0_37 = arith.constant 0 : index
    %39 = vector.load %arg16[%c0_36, %c0_37] : memref<135x128xf32, #tpu.memory_space<vmem>>, vector<135x128xf32>
    %cst_38 = arith.constant dense<0.000000e+00> : vector<2x128xf32>
    %40 = tpu.matmul %38, %39, %cst_38 {dimension_numbers = #tpu.dot_dimension_numbers<[1], [0], [0], [1], [0, 0, 1, 1], [], []>} : vector<2x135xf32>, vector<135x128xf32>, vector<2x128xf32> -> vector<2x128xf32>
    %c0_39 = arith.constant 0 : index
    %c0_40 = arith.constant 0 : index
    %41 = vector.load %arg17[%c0_39, %c0_40] : memref<1x128xf32, #tpu.memory_space<vmem>>, vector<1x128xf32>
    %42 = vector.broadcast %41 : vector<1x128xf32> to vector<2x128xf32>
    %43 = arith.addf %40, %42 : vector<2x128xf32>
    %c0_41 = arith.constant 0 : index
    %c0_42 = arith.constant 0 : index
    %44 = vector.load %arg18[%c0_41, %c0_42] : memref<135x64xf32, #tpu.memory_space<vmem>>, vector<135x64xf32>
    %cst_43 = arith.constant dense<0.000000e+00> : vector<2x64xf32>
    %45 = tpu.matmul %38, %44, %cst_43 {dimension_numbers = #tpu.dot_dimension_numbers<[1], [0], [0], [1], [0, 0, 1, 1], [], []>} : vector<2x135xf32>, vector<135x64xf32>, vector<2x64xf32> -> vector<2x64xf32>
    %c0_44 = arith.constant 0 : index
    %c0_45 = arith.constant 0 : index
    %46 = vector.load %arg19[%c0_44, %c0_45] : memref<1x64xf32, #tpu.memory_space<vmem>>, vector<1x64xf32>
    %47 = vector.broadcast %46 : vector<1x64xf32> to vector<2x64xf32>
    %48 = arith.addf %45, %47 : vector<2x64xf32>
    %c0_46 = arith.constant 0 : index
    %c0_47 = arith.constant 0 : index
    %49 = vector.load %arg22[%c0_46, %c0_47] : memref<2x128xf32, #tpu.memory_space<vmem>>, vector<2x128xf32>
    tpu.vector_store %arg22[%c0_46, %c0_47], %43 {strides = array<i32>} : memref<2x128xf32, #tpu.memory_space<vmem>>, vector<2x128xf32>,
    %c0_48 = arith.constant 0 : index
    %c0_49 = arith.constant 0 : index
    %50 = vector.load %arg23[%c0_48, %c0_49] : memref<2x64xf32, #tpu.memory_space<vmem>>, vector<2x64xf32>
    tpu.vector_store %arg23[%c0_48, %c0_49], %48 {strides = array<i32>} : memref<2x64xf32, #tpu.memory_space<vmem>>, vector<2x64xf32>,
    %c0_50 = arith.constant 0 : index
    %c0_51 = arith.constant 0 : index
    %51 = vector.load %arg3[%c0_50, %c0_51] : memref<128x128xf32, #tpu.memory_space<vmem>>, vector<128x128xf32>
    %cst_52 = arith.constant dense<0.000000e+00> : vector<2x128xf32>
    %52 = tpu.matmul %43, %51, %cst_52 {dimension_numbers = #tpu.dot_dimension_numbers<[1], [0], [0], [1], [0, 0, 1, 1], [], []>} : vector<2x128xf32>, vector<128x128xf32>, vector<2x128xf32> -> vector<2x128xf32>
    %c0_53 = arith.constant 0 : index
    %c0_54 = arith.constant 0 : index
    %53 = vector.load %arg24[%c0_53, %c0_54] : memref<2x128xf32, #tpu.memory_space<vmem>>, vector<2x128xf32>
    tpu.vector_store %arg24[%c0_53, %c0_54], %52 {strides = array<i32>} : memref<2x128xf32, #tpu.memory_space<vmem>>, vector<2x128xf32>,
    %cst_55 = arith.constant 0.000000e+00 : f32
    %54 = vector.broadcast %cst_55 : f32 to vector<2x64xf32>
    %55 = arith.subf %54, %48 : vector<2x64xf32>
    %56 = math.exp %55 : vector<2x64xf32>
    %57 = tpu.concatenate %56, %56 in 1 : vector<2x64xf32>, vector<2x64xf32> -> vector<2x128xf32>
    %c0_56 = arith.constant 0 : index
    %c0_57 = arith.constant 0 : index
    %58 = vector.load %arg5[%c0_56, %c0_57] : memref<64x128xf32, #tpu.memory_space<vmem>>, vector<64x128xf32>
    %59 = vector.extract_strided_slice %57 {offsets = [0, 0], sizes = [1, 128], strides = [1, 1]} : vector<2x128xf32> to vector<1x128xf32>
    %60 = vector.broadcast %59 : vector<1x128xf32> to vector<64x128xf32>
    %61 = arith.mulf %58, %60 : vector<64x128xf32>
    %62 = vector.extract_strided_slice %57 {offsets = [1, 0], sizes = [1, 128], strides = [1, 1]} : vector<2x128xf32> to vector<1x128xf32>
    %63 = vector.broadcast %62 : vector<1x128xf32> to vector<64x128xf32>
    %64 = arith.mulf %58, %63 : vector<64x128xf32>
    %65 = tpu.concatenate %61, %64 in 0 : vector<64x128xf32>, vector<64x128xf32> -> vector<128x128xf32>
    %c0_58 = arith.constant 0 : index
    %c0_59 = arith.constant 0 : index
    %66 = vector.load %arg4[%c0_58, %c0_59] : memref<128x128xf32, #tpu.memory_space<vmem>>, vector<128x128xf32>
    %cst_60 = arith.constant dense<0.000000e+00> : vector<128x128xf32>
    %67 = tpu.matmul %65, %66, %cst_60 {dimension_numbers = #tpu.dot_dimension_numbers<[1], [0], [0], [1], [0, 0, 1, 1], [], []>} : vector<128x128xf32>, vector<128x128xf32>, vector<128x128xf32> -> vector<128x128xf32>
    %c0_61 = arith.constant 0 : index
    %c0_62 = arith.constant 0 : index
    %68 = vector.load %arg25[%c0_61, %c0_62] : memref<128x128xf32, #tpu.memory_space<vmem>>, vector<128x128xf32>
    tpu.vector_store %arg25[%c0_61, %c0_62], %67 {strides = array<i32>} : memref<128x128xf32, #tpu.memory_space<vmem>>, vector<128x128xf32>,
    return
  }
  func.func @transform_0(%arg0: i32) -> (i32, i32) {
    %c0_i32 = arith.constant 0 : i32
    %c0_i32_0 = arith.constant 0 : i32
    %c0_i32_1 = arith.constant 0 : i32
    return %c0_i32, %c0_i32_0 : i32, i32
  }
  func.func @transform_1(%arg0: i32) -> (i32, i32) {
    %c0_i32 = arith.constant 0 : i32
    %c0_i32_0 = arith.constant 0 : i32
    %c0_i32_1 = arith.constant 0 : i32
    return %c0_i32, %c0_i32_0 : i32, i32
  }
  func.func @transform_2(%arg0: i32) -> (i32, i32) {
    %c0_i32 = arith.constant 0 : i32
    %c0_i32_0 = arith.constant 0 : i32
    %c0_i32_1 = arith.constant 0 : i32
    return %c0_i32, %c0_i32_0 : i32, i32
  }
  func.func @transform_3(%arg0: i32) -> (i32, i32) {
    %c0_i32 = arith.constant 0 : i32
    %c0_i32_0 = arith.constant 0 : i32
    %c0_i32_1 = arith.constant 0 : i32
    return %c0_i32, %c0_i32_0 : i32, i32
  }
  func.func @transform_4(%arg0: i32) -> (i32, i32) {
    %c0_i32 = arith.constant 0 : i32
    %c0_i32_0 = arith.constant 0 : i32
    %c0_i32_1 = arith.constant 0 : i32
    return %c0_i32, %c0_i32_0 : i32, i32
  }
  func.func @transform_5(%arg0: i32) -> (i32, i32) {
    %c0_i32 = arith.constant 0 : i32
    %c0_i32_0 = arith.constant 0 : i32
    %c0_i32_1 = arith.constant 0 : i32
    return %c0_i32, %c0_i32_0 : i32, i32
  }
  func.func @transform_6(%arg0: i32) -> (i32, i32) {
    %c0_i32 = arith.constant 0 : i32
    %c0_i32_0 = arith.constant 0 : i32
    %c0_i32_1 = arith.constant 0 : i32
    return %c0_i32, %c0_i32_0 : i32, i32
  }
  func.func @transform_7(%arg0: i32) -> (i32, i32) {
    %c0_i32 = arith.constant 0 : i32
    %c0_i32_0 = arith.constant 0 : i32
    %c0_i32_1 = arith.constant 0 : i32
    return %c0_i32, %c0_i32_0 : i32, i32
  }
  func.func @transform_8(%arg0: i32) -> (i32, i32) {
    %c0_i32 = arith.constant 0 : i32
    %c0_i32_0 = arith.constant 0 : i32
    %c0_i32_1 = arith.constant 0 : i32
    return %c0_i32, %c0_i32_0 : i32, i32
  }
  func.func @transform_9(%arg0: i32) -> (i32, i32) {
    %c0_i32 = arith.constant 0 : i32
    %c0_i32_0 = arith.constant 0 : i32
    %c0_i32_1 = arith.constant 0 : i32
    return %c0_i32, %c0_i32_0 : i32, i32
  }
  func.func @transform_10(%arg0: i32) -> (i32, i32) {
    %c0_i32 = arith.constant 0 : i32
    %c0_i32_0 = arith.constant 0 : i32
    %c0_i32_1 = arith.constant 0 : i32
    return %c0_i32, %c0_i32_0 : i32, i32
  }
  func.func @transform_11(%arg0: i32) -> (i32, i32) {
    %c0_i32 = arith.constant 0 : i32
    %c0_i32_0 = arith.constant 0 : i32
    %c0_i32_1 = arith.constant 0 : i32
    return %c0_i32, %c0_i32_0 : i32, i32
  }
  func.func @transform_12(%arg0: i32) -> (i32, i32) {
    %c0_i32 = arith.constant 0 : i32
    %c0_i32_0 = arith.constant 0 : i32
    %c0_i32_1 = arith.constant 0 : i32
    return %c0_i32, %c0_i32_0 : i32, i32
  }
  func.func @transform_13(%arg0: i32) -> (i32, i32) {
    %c0_i32 = arith.constant 0 : i32
    %c0_i32_0 = arith.constant 0 : i32
    %c0_i32_1 = arith.constant 0 : i32
    return %c0_i32, %c0_i32_0 : i32, i32
  }
  func.func @transform_14(%arg0: i32) -> (i32, i32) {
    %c0_i32 = arith.constant 0 : i32
    %c0_i32_0 = arith.constant 0 : i32
    %c0_i32_1 = arith.constant 0 : i32
    return %c0_i32, %c0_i32_0 : i32, i32
  }
  func.func @transform_15(%arg0: i32) -> (i32, i32) {
    %c0_i32 = arith.constant 0 : i32
    %c0_i32_0 = arith.constant 0 : i32
    %c0_i32_1 = arith.constant 0 : i32
    return %c0_i32, %c0_i32_0 : i32, i32
  }
  func.func @transform_16(%arg0: i32) -> (i32, i32) {
    %c0_i32 = arith.constant 0 : i32
    %c0_i32_0 = arith.constant 0 : i32
    %c0_i32_1 = arith.constant 0 : i32
    return %c0_i32, %c0_i32_0 : i32, i32
  }
  func.func @transform_17(%arg0: i32) -> (i32, i32) {
    %c0_i32 = arith.constant 0 : i32
    %c0_i32_0 = arith.constant 0 : i32
    %c0_i32_1 = arith.constant 0 : i32
    return %c0_i32, %c0_i32_0 : i32, i32
  }
  func.func @transform_18(%arg0: i32) -> (i32, i32) {
    %c0_i32 = arith.constant 0 : i32
    %c0_i32_0 = arith.constant 0 : i32
    %c0_i32_1 = arith.constant 0 : i32
    return %c0_i32, %c0_i32_0 : i32, i32
  }
  func.func @transform_19(%arg0: i32) -> (i32, i32) {
    %c0_i32 = arith.constant 0 : i32
    %c0_i32_0 = arith.constant 0 : i32
    %c0_i32_1 = arith.constant 0 : i32
    return %c0_i32, %c0_i32_0 : i32, i32
  }
  func.func @transform_20(%arg0: i32) -> (i32, i32) {
    %c0_i32 = arith.constant 0 : i32
    %c0_i32_0 = arith.constant 0 : i32
    %c0_i32_1 = arith.constant 0 : i32
    return %c0_i32, %c0_i32_0 : i32, i32
  }
  func.func @transform_21(%arg0: i32) -> (i32, i32) {
    %c0_i32 = arith.constant 0 : i32
    %c0_i32_0 = arith.constant 0 : i32
    %c0_i32_1 = arith.constant 0 : i32
    return %c0_i32, %c0_i32_0 : i32, i32
  }
  func.func @transform_22(%arg0: i32) -> (i32, i32) {
    %c0_i32 = arith.constant 0 : i32
    %c0_i32_0 = arith.constant 0 : i32
    %c0_i32_1 = arith.constant 0 : i32
    return %c0_i32, %c0_i32_0 : i32, i32
  }
  func.func @transform_23(%arg0: i32) -> (i32, i32) {
    %c0_i32 = arith.constant 0 : i32
    %c0_i32_0 = arith.constant 0 : i32
    %c0_i32_1 = arith.constant 0 : i32
    return %c0_i32, %c0_i32_0 : i32, i32
  }
  func.func @transform_24(%arg0: i32) -> (i32, i32) {
    %c0_i32 = arith.constant 0 : i32
    %c0_i32_0 = arith.constant 0 : i32
    %c0_i32_1 = arith.constant 0 : i32
    return %c0_i32, %c0_i32_0 : i32, i32
  }
}

</mosaic_0001>

<bundles_post_ra>
// kernel: custom-call.4
= control target key start
LH: loop header
LB: loop body
LE: loop exit
PB: predicated region body
PF: predicated region fallthrough
CT: control target
= control target key end

     0   :  { %s126_s0 = inlined_call_operand.vmem [shape: f32[2,64], index: 0, kind: input, shape index: {}]   ;;  %s127_s1 = inlined_call_operand.vmem [shape: f32[2,64], index: 1, kind: input, shape index: {}]   ;;  %s128_s2 = inlined_call_operand.hbm [shape: c64[2,64], index: 2, kind: output, shape index: {}]  }
   0x1   :  { %s87_s11 = scalar_lea.hbm %s128_s2, 32 }
   0x2   :  { %4 = vsyncpa [#allocation0], 0  ;;  %s5_s14 = sshll.u32 %s126_s0, 4  ;;  %s6_s14 = int_to_ptr.vmem [resolvable:$true] %s5_s14 }
   0x3   :  { %s18_s15 = scalar_lea.vmem %s6_s14, 32  ;;  %p23_p1 = scmp.lt.s32.totalorder %s6_s14, %s6_s14 }
   0x4   :  { %p19_p0 = scmp.ne.s32.totalorder %s6_s14, %s18_s15  ;;  %p24_p2 = scmp.lt.s32.totalorder %s18_s15, %s18_s15 }
   0x6   :  { %p25_p3 = por %p24_p2, %p23_p1 }
   0x8   :  { %p26_p4 = pnand %p25_p3, %p19_p0 }
   0xa   :  { %29 = shalt.err (!%p26_p4)  }
   0xb   :  { %p31_p5 = scmp.ne.s32.totalorder %s128_s2, %s87_s11  ;;  %s32_s0 = scalar_lea.hbm %s128_s2, 64 }
   0xc   :  { %p33_p6 = scmp.lt.u32.totalorder %s32_s0, %s87_s11  ;;  %p34_p7 = scmp.lt.u32.totalorder %s87_s11, %s128_s2 }
   0xe   :  { %p35_p8 = por %p34_p7, %p33_p6 }
  0x10   :  { %p36_p9 = pnand %p35_p8, %p31_p5 }
  0x12   :  { %39 = shalt.err (!%p36_p9)  }
  0x13   :  { %8 = dma.vmem_to_hbm [thread:$0]  %s6_s14, 32, %s128_s2, [#allocation0] }
  0x14   :  { %65 = dma.done.wait [#allocation0], 32  }
  0x15   :  { %66 = vsyncadd [#allocation0], 4294967264 }
  0x16   :  { %10 = vsyncpa [#allocation0], 1 }
  0x17   :  { %11 = vsyncpa [#allocation1], 0  ;;  %s12_s28 = sshll.u32 %s127_s1, 4  ;;  %s13_s28 = int_to_ptr.vmem [resolvable:$true] %s12_s28 }
  0x18   :  { %s40_s29 = scalar_lea.vmem %s13_s28, 32  ;;  %p45_p11 = scmp.lt.s32.totalorder %s13_s28, %s13_s28 }
  0x19   :  { %p41_p10 = scmp.ne.s32.totalorder %s13_s28, %s40_s29  ;;  %p46_p12 = scmp.lt.s32.totalorder %s40_s29, %s40_s29 }
  0x1b   :  { %p47_p13 = por %p46_p12, %p45_p11 }
  0x1d   :  { %p48_p0 = pnand %p47_p13, %p41_p10 }
  0x1f   :  { %51 = shalt.err (!%p48_p0)  }
  0x20   :  { %p53_p1 = scmp.ne.s32.totalorder %s87_s11, %s32_s0  ;;  %p56_p2 = scmp.lt.u32.totalorder %s32_s0, %s32_s0 }
  0x22   :  { %p57_p3 = por %p56_p2, %p34_p7 }
  0x24   :  { %p59_p4 = por %p57_p3, %p33_p6 }
  0x26   :  { %p60_p5 = pnand %p59_p4, %p53_p1 }
  0x28   :  { %63 = shalt.err (!%p60_p5)  }
  0x29   :  { %15 = dma.vmem_to_hbm [thread:$0]  %s13_s28, 32, %s87_s11, [#allocation1] }
  0x2a   :  { %67 = dma.done.wait [#allocation1], 32  }
  0x2b   :  { %68 = vsyncadd [#allocation1], 4294967264 }
  0x2c   :  { %17 = vsyncpa [#allocation1], 1 }

// kernel: custom-call
= control target key start
LH: loop header
LB: loop body
LE: loop exit
PB: predicated region body
PF: predicated region fallthrough
CT: control target
= control target key end

     0   :  { %s126_s0 = inlined_call_operand.vmem [shape: f32[2,64,64], index: 0, kind: input, shape index: {}]   ;;  %s127_s1 = inlined_call_operand.vmem [shape: f32[2,64,64], index: 1, kind: input, shape index: {}]   ;;  %s128_s2 = inlined_call_operand.hbm [shape: c64[2,64,64], index: 2, kind: output, shape index: {}]  }
   0x1   :  { %s87_s11 = scalar_lea.hbm %s128_s2, 2048 }
   0x2   :  { %4 = vsyncpa [#allocation0], 0  ;;  %s5_s14 = sshll.u32 %s126_s0, 4  ;;  %s6_s14 = int_to_ptr.vmem [resolvable:$true] %s5_s14 }
   0x3   :  { %s18_s15 = scalar_lea.vmem %s6_s14, 2048  ;;  %p23_p1 = scmp.lt.s32.totalorder %s6_s14, %s6_s14 }
   0x4   :  { %p19_p0 = scmp.ne.s32.totalorder %s6_s14, %s18_s15  ;;  %p24_p2 = scmp.lt.s32.totalorder %s18_s15, %s18_s15 }
   0x6   :  { %p25_p3 = por %p24_p2, %p23_p1 }
   0x8   :  { %p26_p4 = pnand %p25_p3, %p19_p0 }
   0xa   :  { %29 = shalt.err (!%p26_p4)  }
   0xb   :  { %p31_p5 = scmp.ne.s32.totalorder %s128_s2, %s87_s11  ;;  %s32_s0 = scalar_lea.hbm %s128_s2, 4096 }
   0xc   :  { %p33_p6 = scmp.lt.u32.totalorder %s32_s0, %s87_s11  ;;  %p34_p7 = scmp.lt.u32.totalorder %s87_s11, %s128_s2 }
   0xe   :  { %p35_p8 = por %p34_p7, %p33_p6 }
  0x10   :  { %p36_p9 = pnand %p35_p8, %p31_p5 }
  0x12   :  { %39 = shalt.err (!%p36_p9)  }
  0x13   :  { %8 = dma.vmem_to_hbm [thread:$0]  %s6_s14, 2048, %s128_s2, [#allocation0] }
  0x14   :  { %65 = dma.done.wait [#allocation0], 2048  }
  0x15   :  { %66 = vsyncadd [#allocation0], 4294965248 }
  0x16   :  { %10 = vsyncpa [#allocation0], 1 }
  0x17   :  { %11 = vsyncpa [#allocation1], 0  ;;  %s12_s28 = sshll.u32 %s127_s1, 4  ;;  %s13_s28 = int_to_ptr.vmem [resolvable:$true] %s12_s28 }
  0x18   :  { %s40_s29 = scalar_lea.vmem %s13_s28, 2048  ;;  %p45_p11 = scmp.lt.s32.totalorder %s13_s28, %s13_s28 }
  0x19   :  { %p41_p10 = scmp.ne.s32.totalorder %s13_s28, %s40_s29  ;;  %p46_p12 = scmp.lt.s32.totalorder %s40_s29, %s40_s29 }
  0x1b   :  { %p47_p13 = por %p46_p12, %p45_p11 }
  0x1d   :  { %p48_p0 = pnand %p47_p13, %p41_p10 }
  0x1f   :  { %51 = shalt.err (!%p48_p0)  }
  0x20   :  { %p53_p1 = scmp.ne.s32.totalorder %s87_s11, %s32_s0  ;;  %p56_p2 = scmp.lt.u32.totalorder %s32_s0, %s32_s0 }
  0x22   :  { %p57_p3 = por %p56_p2, %p34_p7 }
  0x24   :  { %p59_p4 = por %p57_p3, %p33_p6 }
  0x26   :  { %p60_p5 = pnand %p59_p4, %p53_p1 }
  0x28   :  { %63 = shalt.err (!%p60_p5)  }
  0x29   :  { %15 = dma.vmem_to_hbm [thread:$0]  %s13_s28, 2048, %s87_s11, [#allocation1] }
  0x2a   :  { %67 = dma.done.wait [#allocation1], 2048  }
  0x2b   :  { %68 = vsyncadd [#allocation1], 4294965248 }
  0x2c   :  { %17 = vsyncpa [#allocation1], 1 }

// kernel: custom-call.1
= control target key start
LH: loop header
LB: loop body
LE: loop exit
PB: predicated region body
PF: predicated region fallthrough
CT: control target
= control target key end

     0   :  { %s126_s0 = inlined_call_operand.vmem [shape: f32[2,16,4], index: 0, kind: input, shape index: {}]   ;;  %s127_s1 = inlined_call_operand.vmem [shape: f32[2,16,4], index: 1, kind: input, shape index: {}]   ;;  %s128_s2 = inlined_call_operand.hbm [shape: c64[2,16,4], index: 2, kind: output, shape index: {}]  }
   0x1   :  { %s87_s11 = scalar_lea.hbm %s128_s2, 128 }
   0x2   :  { %4 = vsyncpa [#allocation0], 0  ;;  %s5_s14 = sshll.u32 %s126_s0, 4  ;;  %s6_s14 = int_to_ptr.vmem [resolvable:$true] %s5_s14 }
   0x3   :  { %s18_s15 = scalar_lea.vmem %s6_s14, 128  ;;  %p23_p1 = scmp.lt.s32.totalorder %s6_s14, %s6_s14 }
   0x4   :  { %p19_p0 = scmp.ne.s32.totalorder %s6_s14, %s18_s15  ;;  %p24_p2 = scmp.lt.s32.totalorder %s18_s15, %s18_s15 }
   0x6   :  { %p25_p3 = por %p24_p2, %p23_p1 }
   0x8   :  { %p26_p4 = pnand %p25_p3, %p19_p0 }
   0xa   :  { %29 = shalt.err (!%p26_p4)  }
   0xb   :  { %p31_p5 = scmp.ne.s32.totalorder %s128_s2, %s87_s11  ;;  %s32_s0 = scalar_lea.hbm %s128_s2, 256 }
   0xc   :  { %p33_p6 = scmp.lt.u32.totalorder %s32_s0, %s87_s11  ;;  %p34_p7 = scmp.lt.u32.totalorder %s87_s11, %s128_s2 }
   0xe   :  { %p35_p8 = por %p34_p7, %p33_p6 }
  0x10   :  { %p36_p9 = pnand %p35_p8, %p31_p5 }
  0x12   :  { %39 = shalt.err (!%p36_p9)  }
  0x13   :  { %8 = dma.vmem_to_hbm [thread:$0]  %s6_s14, 128, %s128_s2, [#allocation0] }
  0x14   :  { %65 = dma.done.wait [#allocation0], 128  }
  0x15   :  { %66 = vsyncadd [#allocation0], 4294967168 }
  0x16   :  { %10 = vsyncpa [#allocation0], 1 }
  0x17   :  { %11 = vsyncpa [#allocation1], 0  ;;  %s12_s28 = sshll.u32 %s127_s1, 4  ;;  %s13_s28 = int_to_ptr.vmem [resolvable:$true] %s12_s28 }
  0x18   :  { %s40_s29 = scalar_lea.vmem %s13_s28, 128  ;;  %p45_p11 = scmp.lt.s32.totalorder %s13_s28, %s13_s28 }
  0x19   :  { %p41_p10 = scmp.ne.s32.totalorder %s13_s28, %s40_s29  ;;  %p46_p12 = scmp.lt.s32.totalorder %s40_s29, %s40_s29 }
  0x1b   :  { %p47_p13 = por %p46_p12, %p45_p11 }
  0x1d   :  { %p48_p0 = pnand %p47_p13, %p41_p10 }
  0x1f   :  { %51 = shalt.err (!%p48_p0)  }
  0x20   :  { %p53_p1 = scmp.ne.s32.totalorder %s87_s11, %s32_s0  ;;  %p56_p2 = scmp.lt.u32.totalorder %s32_s0, %s32_s0 }
  0x22   :  { %p57_p3 = por %p56_p2, %p34_p7 }
  0x24   :  { %p59_p4 = por %p57_p3, %p33_p6 }
  0x26   :  { %p60_p5 = pnand %p59_p4, %p53_p1 }
  0x28   :  { %63 = shalt.err (!%p60_p5)  }
  0x29   :  { %15 = dma.vmem_to_hbm [thread:$0]  %s13_s28, 128, %s87_s11, [#allocation1] }
  0x2a   :  { %67 = dma.done.wait [#allocation1], 128  }
  0x2b   :  { %68 = vsyncadd [#allocation1], 4294967168 }
  0x2c   :  { %17 = vsyncpa [#allocation1], 1 }

// kernel: fused_forward.1
= control target key start
LH: loop header
LB: loop body
LE: loop exit
PB: predicated region body
PF: predicated region fallthrough
CT: control target
= control target key end

     0   :  { %s3315_s0 = inlined_call_operand.vmem [shape: f32[2,128], index: 0, kind: input, shape index: {}]   ;;  %s3316_s1 = inlined_call_operand.vmem [shape: f32[128,128], index: 1, kind: input, shape index: {}]   ;;  %s3317_s2 = inlined_call_operand.vmem [shape: f32[128,128], index: 2, kind: input, shape index: {}]   ;;  %s3318_s3 = inlined_call_operand.vmem [shape: f32[128,128], index: 3, kind: input, shape index: {}]   ;;  %s3319_s4 = inlined_call_operand.vmem [shape: f32[64,128], index: 4, kind: input, shape index: {}]   ;;  %s3320_s5 = inlined_call_operand.vmem [shape: f32[128,216], index: 5, kind: input, shape index: {}]   ;;  %s3321_s6 = inlined_call_operand.vmem [shape: f32[1,216], index: 6, kind: input, shape index: {}]   ;;  %s3322_s7 = inlined_call_operand.vmem [shape: f32[216,288], index: 7, kind: input, shape index: {}]   ;;  %s3323_s8 = inlined_call_operand.vmem [shape: f32[1,288], index: 8, kind: input, shape index: {}]   ;;  %s3324_s9 = inlined_call_operand.vmem [shape: f32[288,32], index: 9, kind: input, shape index: {}]   ;;  %s3325_s10 = inlined_call_operand.vmem [shape: f32[1,32], index: 10, kind: input, shape index: {}]   ;;  %s3326_s11 = inlined_call_operand.vmem [shape: f32[16,216], index: 11, kind: input, shape index: {}]   ;;  %s3327_s12 = inlined_call_operand.vmem [shape: f32[1,216], index: 12, kind: input, shape index: {}]   ;;  %s3328_s13 = inlined_call_operand.vmem [shape: f32[216,135], index: 13, kind: input, shape index: {}]   ;;  %s3329_s14 = inlined_call_operand.vmem [shape: f32[1,135], index: 14, kind: input, shape index: {}]   ;;  %s3330_s15 = inlined_call_operand.vmem [shape: f32[135,128], index: 15, kind: input, shape index: {}]   ;;  %s3331_s16 = inlined_call_operand.vmem [shape: f32[1,128], index: 16, kind: input, shape index: {}]   ;;  %s3332_s17 = inlined_call_operand.vmem [shape: f32[135,64], index: 17, kind: input, shape index: {}]   ;;  %s3333_s18 = inlined_call_operand.vmem [shape: f32[1,64], index: 18, kind: input, shape index: {}]   ;;  %s3334_s19 = inlined_call_operand.vmem [shape: f32[2,128], index: 19, kind: output, shape index: {0}]   ;;  %s3335_s20 = inlined_call_operand.vmem [shape: f32[2,32], index: 20, kind: output, shape index: {1}]   ;;  %s3336_s21 = inlined_call_operand.vmem [shape: f32[2,128], index: 21, kind: output, shape index: {2}]   ;;  %s3337_s22 = inlined_call_operand.hbm [shape: f32[2,64], index: 22, kind: output, shape index: {3}]   ;;  %s3338_s23 = inlined_call_operand.vmem [shape: f32[2,128], index: 23, kind: output, shape index: {4}]   ;;  %s3339_s24 = inlined_call_operand.vmem [shape: f32[128,128], index: 24, kind: output, shape index: {5}]  }
   0x1   :  { %3346 = sst [smem:[#allocation5_spill]] %s3315_s0 }
   0x2   :  { %3347 = sst [smem:[#allocation6_spill]] %s3316_s1 }
   0x3   :  { %3348 = sst [smem:[#allocation7_spill]] %s3317_s2 }
   0x4   :  { %3349 = sst [smem:[#allocation8_spill]] %s3318_s3 }
   0x5   :  { %3350 = sst [smem:[#allocation9_spill]] %s3319_s4 }
   0x6   :  { %3351 = sst [smem:[#allocation10_spill]] %s3320_s5 }
   0x7   :  { %3352 = sst [smem:[#allocation11_spill]] %s3321_s6 }
   0x8   :  { %3353 = sst [smem:[#allocation12_spill]] %s3322_s7 }
   0x9   :  { %3354 = sst [smem:[#allocation13_spill]] %s3323_s8 }
   0xa   :  { %s3355_s27 = sld [smem:[#allocation6_spill]]  ;;  %v2116_v3 = vmov 0.0|0.0   ;;  %vm2117_vm0 = vmmov 0   ;;  %v2118_v6 = vmov 0.0  }
   0xb   :  { %1740 = vmatprep.subr.bf16.mxu0 %v2116_v3  ;;  %1635 = vmatprep.mubr.msk.f32.mxu0 %vm2117_vm0, %v2118_v6 }
   0xc   :  { %1848 = vmatprep.subr.bf16.mxu1 %v2116_v3 }
  0x10   :  { %v70_v0 = vld [vmem:[%s3355_s27] sm:$0xff]  ;;  %v71_v1 = vld [vmem:[%s3355_s27 + $0x8] sm:$0xff]  ;;  %v72_v2 = vld [vmem:[%s3355_s27 + $0x10] sm:$0xff] }
  0x11   :  { %v1741_v4 = vpack.c.bf16 %v71_v1, %v70_v0  ;;  %v73_v5 = vld [vmem:[%s3355_s27 + $0x18] sm:$0xff]  ;;  %v74_v8 = vld [vmem:[%s3355_s27 + $0x20] sm:$0xff]  ;;  %v75_v9 = vld [vmem:[%s3355_s27 + $0x28] sm:$0xff] }
  0x12   :  { %v1744_v7 = vpack.c.bf16 %v73_v5, %v72_v2  ;;  %v1747_v10 = vpack.c.bf16 %v75_v9, %v74_v8  ;;  %v76_v11 = vld [vmem:[%s3355_s27 + $0x30] sm:$0xff]  ;;  %v77_v12 = vld [vmem:[%s3355_s27 + $0x38] sm:$0xff]  ;;  %v78_v14 = vld [vmem:[%s3355_s27 + $0x40] sm:$0xff] }
  0x13   :  { %1742 = vmatpush3.bf16.msra.mxu0 %v1741_v4  ;;  %v1750_v13 = vpack.c.bf16 %v77_v12, %v76_v11  ;;  %v79_v15 = vld [vmem:[%s3355_s27 + $0x48] sm:$0xff]  ;;  %v80_v17 = vld [vmem:[%s3355_s27 + $0x50] sm:$0xff]  ;;  %v81_v18 = vld [vmem:[%s3355_s27 + $0x58] sm:$0xff] }
  0x14   :  { %1743 = vmatprep.subr.bf16.mxu0 %v2116_v3  ;;  %v1753_v16 = vpack.c.bf16 %v79_v15, %v78_v14 }
  0x17   :  { %1745 = vmatpush3.bf16.msra.mxu0 %v1744_v7 }
  0x18   :  { %1746 = vmatprep.subr.bf16.mxu0 %v2116_v3 }
  0x1b   :  { %1748 = vmatpush3.bf16.msra.mxu0 %v1747_v10 }
  0x1c   :  { %1749 = vmatprep.subr.bf16.mxu0 %v2116_v3 }
  0x1f   :  { %1751 = vmatpush3.bf16.msra.mxu0 %v1750_v13 }
  0x20   :  { %1752 = vmatprep.subr.bf16.mxu0 %v2116_v3 }
  0x21   :  { %30 = vsyncpa [#allocation3], 0  ;;  %v1756_v19 = vpack.c.bf16 %v81_v18, %v80_v17  ;;  %v82_v20 = vld [vmem:[%s3355_s27 + $0x60] sm:$0xff]  ;;  %v83_v21 = vld [vmem:[%s3355_s27 + $0x68] sm:$0xff]  ;;  %s3356_s0 = sld [smem:[#allocation10_spill]]  ;;  %s3357_s2 = sld [smem:[#allocation5_spill]] }
  0x22   :  { %v1759_v22 = vpack.c.bf16 %v83_v21, %v82_v20  ;;  %v84_v23 = vld [vmem:[%s3355_s27 + $0x70] sm:$0xff]  ;;  %v85_v24 = vld [vmem:[%s3355_s27 + $0x78] sm:$0xff]  ;;  %s3358_s6 = sld [smem:[#allocation12_spill]]  ;;  %vm372_vm1 = vcmask 719872   ;;  %s3360_s28 = sld [smem:[#allocation13_spill]]  ;;  %vm563_vm2 = vcmask 261120  }
  0x23   :  { %1754 = vmatpush3.bf16.msra.mxu0 %v1753_v16  ;;  %v1762_v27 = vpack.c.bf16 %v85_v24, %v84_v23  ;;  %vm707_vm3 = vcmask 254976   ;;  %vm725_vm4 = vcmask 130048   ;;  %vm972_vm5 = vcmask 1046528   ;;  %s3361_s26 = sld [smem:[#allocation7_spill]] }
  0x24   :  { %1755 = vmatprep.subr.bf16.mxu0 %v2116_v3  ;;  %vm968_vm6 = vcmask 56320   ;;  %vm1144_vm7 = vcmask 517120   ;;  %vm1240_vm8 = vcmask 523264  }
  0x27   :  { %1757 = vmatpush3.bf16.msra.mxu0 %v1756_v19  ;;  %v158_v25 = vld [vmem:[%s3356_s0 + $0x8] sm:$0xff]  ;;  %v160_v26 = vld [vmem:[%s3356_s0 + $0x18] sm:$0xff]  ;;  %v157_v29 = vld [vmem:[%s3356_s0] sm:$0xff] }
  0x28   :  { %1758 = vmatprep.subr.bf16.mxu0 %v2116_v3  ;;  %v1764_v28 = vpack.c.bf16 %v160_v26, %v158_v25  ;;  %v159_v30 = vld [vmem:[%s3356_s0 + $0x10] sm:$0xff]  ;;  %v162_v31 = vld [vmem:[%s3356_s0 + $0x28] sm:$0xff]  ;;  %v164_v32 = vld [vmem:[%s3356_s0 + $0x38] sm:$0xff] }
  0x29   :  { %v69_v33 = vld [vmem:[%s3357_s2] sm:$0x3]  ;;  %v1766_v34 = vpack.c.bf16 %v159_v30, %v157_v29  ;;  %v1768_v35 = vpack.c.bf16 %v164_v32, %v162_v31  ;;  %v163_v37 = vld [vmem:[%s3356_s0 + $0x30] sm:$0xff]  ;;  %v166_v38 = vld [vmem:[%s3356_s0 + $0x48] sm:$0xff] }
  0x2a   :  { %v161_v36 = vld [vmem:[%s3356_s0 + $0x20] sm:$0xff]  ;;  %v168_v39 = vld [vmem:[%s3356_s0 + $0x58] sm:$0xff]  ;;  %v167_v43 = vld [vmem:[%s3356_s0 + $0x50] sm:$0xff] }
  0x2b   :  { %1760 = vmatpush3.bf16.msra.mxu0 %v1759_v22  ;;  %v1770_v40 = vpack.c.bf16 %v163_v37, %v161_v36  ;;  %v1772_v41 = vpack.c.bf16 %v168_v39, %v166_v38  ;;  %v165_v42 = vld [vmem:[%s3356_s0 + $0x40] sm:$0xff]  ;;  %v170_v44 = vld [vmem:[%s3356_s0 + $0x68] sm:$0xff]  ;;  %v172_v45 = vld [vmem:[%s3356_s0 + $0x78] sm:$0xff] }
  0x2c   :  { %1761 = vmatprep.subr.bf16.mxu0 %v2116_v3  ;;  %v1774_v46 = vpack.c.bf16 %v167_v43, %v165_v42  ;;  %v1776_v47 = vpack.c.bf16 %v172_v45, %v170_v44  ;;  %v169_v48 = vld [vmem:[%s3356_s0 + $0x60] sm:$0xff]  ;;  %v171_v49 = vld [vmem:[%s3356_s0 + $0x70] sm:$0xff]  ;;  %v174_v50 = vld [vmem:[%s3356_s0 + $0x88] sm:$0xff] }
  0x2d   :  { %v176_v51 = vld [vmem:[%s3356_s0 + $0x98] sm:$0xff]  ;;  %v1778_v52 = vpack.c.bf16 %v171_v49, %v169_v48  ;;  %v173_v54 = vld [vmem:[%s3356_s0 + $0x80] sm:$0xff]  ;;  %v175_v55 = vld [vmem:[%s3356_s0 + $0x90] sm:$0xff] }
  0x2e   :  { %v1780_v53 = vpack.c.bf16 %v176_v51, %v174_v50  ;;  %v178_v56 = vld [vmem:[%s3356_s0 + $0xa8] sm:$0xff]  ;;  %v180_v57 = vld [vmem:[%s3356_s0 + $0xb8] sm:$0xff]  ;;  %v1782_v58 = vpack.c.bf16 %v175_v55, %v173_v54  ;;  %v177_v60 = vld [vmem:[%s3356_s0 + $0xa0] sm:$0xff] }
  0x2f   :  { %1763 = vmatpush3.bf16.msra.mxu0 %v1762_v27  ;;  %v1784_v59 = vpack.c.bf16 %v180_v57, %v178_v56  ;;  %v179_v61 = vld [vmem:[%s3356_s0 + $0xb0] sm:$0xff]  ;;  %v182_v62 = vld [vmem:[%s3356_s0 + $0xc8] sm:$0xff]  ;;  %v184_v63 = vld [vmem:[%s3356_s0 + $0xd8] sm:$0xff] }
  0x30   :  { %1765 = vmatprep.subr.bf16.mxu0 %v1764_v28  ;;  %v1786_v0 = vpack.c.bf16 %v179_v61, %v177_v60  ;;  %v1788_v1 = vpack.c.bf16 %v184_v63, %v182_v62  ;;  %v181_v2 = vld [vmem:[%s3356_s0 + $0xc0] sm:$0xff]  ;;  %v183_v4 = vld [vmem:[%s3356_s0 + $0xd0] sm:$0xff]  ;;  %v186_v5 = vld [vmem:[%s3356_s0 + $0xe8] sm:$0xff] }
  0x31   :  { %v188_v7 = vld [vmem:[%s3356_s0 + $0xf8] sm:$0xff]  ;;  %v1790_v8 = vpack.c.bf16 %v183_v4, %v181_v2  ;;  %v185_v10 = vld [vmem:[%s3356_s0 + $0xe0] sm:$0xff]  ;;  %v187_v11 = vld [vmem:[%s3356_s0 + $0xf0] sm:$0xff]  ;;  %s3359_s0 = sld [smem:[#allocation11_spill]] }
  0x32   :  { %1636 = vmatmul.mubr.f32.vlgmr.msra.gmra.mrb[0].mxu0 %v69_v33  ;;  %v1792_v9 = vpack.c.bf16 %v188_v7, %v186_v5  ;;  %v1794_v12 = vpack.c.bf16 %v187_v11, %v185_v10  ;;  %v275_v13 = vld [vmem:[%s3358_s6 + $0x8] sm:$0xff]  ;;  %v278_v14 = vld [vmem:[%s3358_s6 + $0x20] sm:$0xff]  ;;  %v276_v16 = vld [vmem:[%s3358_s6 + $0x10] sm:$0xff] }
  0x33   :  { %1767 = vmatpush1.bf16.msra.mxu0 %v1766_v34  ;;  %265 = vmatprep.mubr.f32.mxu0 %v2118_v6  ;;  %v1796_v15 = vpack.c.bf16 %v278_v14, %v275_v13  ;;  %v279_v17 = vld [vmem:[%s3358_s6 + $0x28] sm:$0xff]  ;;  %v282_v19 = vld [vmem:[%s3358_s6 + $0x40] sm:$0xff]  ;;  %v285_v20 = vld [vmem:[%s3358_s6 + $0x58] sm:$0xff] }
  0x34   :  { %1769 = vmatprep.subr.bf16.mxu0 %v1768_v35  ;;  %v1849_v18 = vpack.c.bf16 %v279_v17, %v276_v16  ;;  %v1852_v21 = vpack.c.bf16 %v285_v20, %v282_v19  ;;  %v288_v22 = vld [vmem:[%s3358_s6 + $0x70] sm:$0xff]  ;;  %v291_v23 = vld [vmem:[%s3358_s6 + $0x88] sm:$0xff]  ;;  %v294_v25 = vld [vmem:[%s3358_s6 + $0xa0] sm:$0xff] }
  0x35   :  { %v1855_v24 = vpack.c.bf16 %v291_v23, %v288_v22  ;;  %v297_v26 = vld [vmem:[%s3358_s6 + $0xb8] sm:$0xff]  ;;  %v300_v28 = vld [vmem:[%s3358_s6 + $0xd0] sm:$0xff]  ;;  %v303_v29 = vld [vmem:[%s3358_s6 + $0xe8] sm:$0xff] }
  0x36   :  { %1850 = vmatpush1.bf16.msra.mxu1 %v1849_v18  ;;  %v1858_v27 = vpack.c.bf16 %v297_v26, %v294_v25  ;;  %v1861_v30 = vpack.c.bf16 %v303_v29, %v300_v28  ;;  %v306_v31 = vld [vmem:[%s3358_s6 + $0x100] sm:$0xff]  ;;  %v309_v32 = vld [vmem:[%s3358_s6 + $0x118] sm:$0xff]  ;;  %v312_v34 = vld [vmem:[%s3358_s6 + $0x130] sm:$0xff] }
  0x37   :  { %1771 = vmatpush1.bf16.msra.mxu0 %v1770_v40  ;;  %1851 = vmatprep.subr.bf16.mxu1 %v2116_v3  ;;  %v1864_v33 = vpack.c.bf16 %v309_v32, %v306_v31  ;;  %v315_v35 = vld [vmem:[%s3358_s6 + $0x148] sm:$0xff]  ;;  %v318_v37 = vld [vmem:[%s3358_s6 + $0x160] sm:$0xff]  ;;  %v321_v38 = vld [vmem:[%s3358_s6 + $0x178] sm:$0xff] }
  0x38   :  { %1773 = vmatprep.subr.bf16.mxu0 %v1772_v41  ;;  %v1867_v36 = vpack.c.bf16 %v315_v35, %v312_v34  ;;  %v1870_v39 = vpack.c.bf16 %v321_v38, %v318_v37  ;;  %v324_v40 = vld [vmem:[%s3358_s6 + $0x190] sm:$0xff]  ;;  %v327_v41 = vld [vmem:[%s3358_s6 + $0x1a8] sm:$0xff]  ;;  %v330_v43 = vld [vmem:[%s3358_s6 + $0x1c0] sm:$0xff] }
  0x39   :  { %v1873_v42 = vpack.c.bf16 %v327_v41, %v324_v40  ;;  %v333_v44 = vld [vmem:[%s3358_s6 + $0x1d8] sm:$0xff]  ;;  %v342_v49 = vld [vmem:[%s3358_s6 + $0x220] sm:$0xff]  ;;  %v284_v55 = vld [vmem:[%s3358_s6 + $0x50] sm:$0xff] }
  0x3a   :  { %1853 = vmatpush1.bf16.msra.mxu1 %v1852_v21  ;;  %v1876_v45 = vpack.c.bf16 %v333_v44, %v330_v43  ;;  %v345_v50 = vld [vmem:[%s3358_s6 + $0x238] sm:$0xff]  ;;  %v287_v61 = vld [vmem:[%s3358_s6 + $0x68] sm:$0xff]  ;;  %v290_v62 = vld [vmem:[%s3358_s6 + $0x80] sm:$0xff] }
  0x3b   :  { %1775 = vmatpush1.bf16.msra.mxu0 %v1774_v46  ;;  %1854 = vmatprep.subr.bf16.mxu1 %v2116_v3  ;;  %v336_v46 = vld [vmem:[%s3358_s6 + $0x1f0] sm:$0xff]  ;;  %v1882_v51 = vpack.c.bf16 %v345_v50, %v342_v49  ;;  %v281_v54 = vld [vmem:[%s3358_s6 + $0x38] sm:$0xff]  ;;  %v286_v2 = vld [vmem:[%s3358_s6 + $0x60] sm:$0xff] }
  0x3c   :  { %1777 = vmatprep.subr.bf16.mxu0 %v1776_v47  ;;  %v339_v47 = vld [vmem:[%s3358_s6 + $0x208] sm:$0xff]  ;;  %v1800_v57 = vpack.c.bf16 %v284_v55, %v281_v54  ;;  %v289_v4 = vld [vmem:[%s3358_s6 + $0x78] sm:$0xff]  ;;  %v296_v7 = vld [vmem:[%s3358_s6 + $0xb0] sm:$0xff] }
  0x3d   :  { %v1879_v48 = vpack.c.bf16 %v339_v47, %v336_v46  ;;  %v293_v5 = vld [vmem:[%s3358_s6 + $0x98] sm:$0xff]  ;;  %v292_v10 = vld [vmem:[%s3358_s6 + $0x90] sm:$0xff]  ;;  %v295_v11 = vld [vmem:[%s3358_s6 + $0xa8] sm:$0xff] }
  0x3e   :  { %1856 = vmatpush1.bf16.msra.mxu1 %v1855_v24  ;;  %v302_v13 = vld [vmem:[%s3358_s6 + $0xe0] sm:$0xff]  ;;  %v1810_v14 = vpack.c.bf16 %v295_v11, %v292_v10  ;;  %v301_v17 = vld [vmem:[%s3358_s6 + $0xd8] sm:$0xff]  ;;  %v308_v19 = vld [vmem:[%s3358_s6 + $0x110] sm:$0xff] }
  0x3f   :  { %1779 = vmatpush1.bf16.msra.mxu0 %v1778_v52  ;;  %1857 = vmatprep.subr.bf16.mxu1 %v2116_v3  ;;  %v274_v52 = vld [vmem:[%s3358_s6] sm:$0xff]  ;;  %v305_v18 = vld [vmem:[%s3358_s6 + $0xf8] sm:$0xff]  ;;  %v304_v22 = vld [vmem:[%s3358_s6 + $0xf0] sm:$0xff] }
  0x40   :  { %1781 = vmatprep.subr.bf16.mxu0 %v1780_v53  ;;  %v277_v53 = vld [vmem:[%s3358_s6 + $0x18] sm:$0xff]  ;;  %v298_v16 = vld [vmem:[%s3358_s6 + $0xc0] sm:$0xff]  ;;  %v1816_v21 = vpack.c.bf16 %v308_v19, %v305_v18  ;;  %v307_v23 = vld [vmem:[%s3358_s6 + $0x108] sm:$0xff] }
  0x41   :  { %v1798_v56 = vpack.c.bf16 %v277_v53, %v274_v52  ;;  %v1814_v20 = vpack.c.bf16 %v301_v17, %v298_v16  ;;  %v311_v24 = vld [vmem:[%s3358_s6 + $0x128] sm:$0xff]  ;;  %v314_v25 = vld [vmem:[%s3358_s6 + $0x140] sm:$0xff]  ;;  %v1818_v26 = vpack.c.bf16 %v307_v23, %v304_v22  ;;  %v313_v29 = vld [vmem:[%s3358_s6 + $0x138] sm:$0xff] }
  0x42   :  { %1859 = vmatpush1.bf16.msra.mxu1 %v1858_v27  ;;  %v1820_v27 = vpack.c.bf16 %v314_v25, %v311_v24  ;;  %v310_v28 = vld [vmem:[%s3358_s6 + $0x120] sm:$0xff]  ;;  %v320_v31 = vld [vmem:[%s3358_s6 + $0x170] sm:$0xff]  ;;  %v319_v35 = vld [vmem:[%s3358_s6 + $0x168] sm:$0xff] }
  0x43   :  { %1783 = vmatpush1.bf16.msra.mxu0 %v1782_v58  ;;  %1860 = vmatprep.subr.bf16.mxu1 %v2116_v3  ;;  %v280_v58 = vld [vmem:[%s3358_s6 + $0x30] sm:$0xff]  ;;  %v1822_v32 = vpack.c.bf16 %v313_v29, %v310_v28  ;;  %v326_v37 = vld [vmem:[%s3358_s6 + $0x1a0] sm:$0xff]  ;;  %v325_v41 = vld [vmem:[%s3358_s6 + $0x198] sm:$0xff] }
  0x44   :  { %1785 = vmatprep.subr.bf16.mxu0 %v1784_v59  ;;  %v283_v59 = vld [vmem:[%s3358_s6 + $0x48] sm:$0xff]  ;;  %v316_v34 = vld [vmem:[%s3358_s6 + $0x150] sm:$0xff]  ;;  %v322_v40 = vld [vmem:[%s3358_s6 + $0x180] sm:$0xff] }
  0x45   :  { %v1826_v38 = vpack.c.bf16 %v319_v35, %v316_v34  ;;  %v332_v43 = vld [vmem:[%s3358_s6 + $0x1d0] sm:$0xff]  ;;  %v1830_v44 = vpack.c.bf16 %v325_v41, %v322_v40  ;;  %v331_v47 = vld [vmem:[%s3358_s6 + $0x1c8] sm:$0xff]  ;;  %v338_v49 = vld [vmem:[%s3358_s6 + $0x200] sm:$0xff] }
  0x46   :  { %1862 = vmatpush1.bf16.msra.mxu1 %v1861_v30  ;;  %v317_v30 = vld [vmem:[%s3358_s6 + $0x158] sm:$0xff]  ;;  %v328_v46 = vld [vmem:[%s3358_s6 + $0x1b0] sm:$0xff]  ;;  %v334_v52 = vld [vmem:[%s3358_s6 + $0x1e0] sm:$0xff] }
  0x47   :  { %1787 = vmatpush1.bf16.msra.mxu0 %v1786_v0  ;;  %1863 = vmatprep.subr.bf16.mxu1 %v2116_v3  ;;  %v1802_v0 = vpack.c.bf16 %v283_v59, %v280_v58  ;;  %v1834_v50 = vpack.c.bf16 %v331_v47, %v328_v46  ;;  %v337_v53 = vld [vmem:[%s3358_s6 + $0x1f8] sm:$0xff]  ;;  %v344_v55 = vld [vmem:[%s3358_s6 + $0x230] sm:$0xff]  ;;  %v343_v59 = vld [vmem:[%s3358_s6 + $0x228] sm:$0xff] }
  0x48   :  { %1789 = vmatprep.subr.bf16.mxu0 %v1788_v1  ;;  %v1804_v1 = vpack.c.bf16 %v290_v62, %v287_v61  ;;  %v341_v54 = vld [vmem:[%s3358_s6 + $0x218] sm:$0xff]  ;;  %v340_v58 = vld [vmem:[%s3358_s6 + $0x210] sm:$0xff]  ;;  %v347_v61 = vld [vmem:[%s3358_s6 + $0x248] sm:$0xff] }
  0x49   :  { %v350_v62 = vld [vmem:[%s3358_s6 + $0x260] sm:$0xff]  ;;  %v521_v25 = vld [vmem:[%s3324_s9 + $0x8] sm:$0xff]  ;;  %v538_v29 = vld [vmem:[%s3324_s9 + $0x90] sm:$0xff] }
  0x4a   :  { %1865 = vmatpush1.bf16.msra.mxu1 %v1864_v33  ;;  %v1824_v33 = vpack.c.bf16 %v320_v31, %v317_v30  ;;  %v354_v10 = vld [vmem:[%s3358_s6 + $0x280] sm:$0xff]  ;;  %v539_v30 = vld [vmem:[%s3324_s9 + $0x98] sm:$0xff] }
  0x4b   :  { %1791 = vmatpush1.bf16.msra.mxu0 %v1790_v8  ;;  %1866 = vmatprep.subr.bf16.mxu1 %v2116_v3  ;;  %v1806_v8 = vpack.c.bf16 %v289_v4, %v286_v2  ;;  %v348_v2 = vld [vmem:[%s3358_s6 + $0x250] sm:$0xff]  ;;  %v536_v11 = vld [vmem:[%s3324_s9 + $0x80] sm:$0xff]  ;;  %v1891_v35 = vpack.c.bf16 %v539_v30, %v538_v29 }
  0x4c   :  { %1793 = vmatprep.subr.bf16.mxu0 %v1792_v9  ;;  %v1808_v9 = vpack.c.bf16 %v296_v7, %v293_v5  ;;  %v351_v5 = vld [vmem:[%s3358_s6 + $0x268] sm:$0xff]  ;;  %v189_v17 = vld [vmem:[%s3359_s0] sm:$0x3] }
  0x4d   :  { %v1885_v7 = vpack.c.bf16 %v351_v5, %v348_v2  ;;  %v520_v22 = vld [vmem:[%s3324_s9] sm:$0xff] }
  0x4e   :  { %1868 = vmatpush1.bf16.msra.mxu1 %v1867_v36  ;;  %v323_v36 = vld [vmem:[%s3358_s6 + $0x188] sm:$0xff]  ;;  %v532_v2 = vld [vmem:[%s3324_s9 + $0x60] sm:$0xff] }
  0x4f   :  { %1795 = vmatpush1.bf16.msra.mxu0 %v1794_v12  ;;  %1869 = vmatprep.subr.bf16.mxu1 %v2116_v3  ;;  %v299_v12 = vld [vmem:[%s3358_s6 + $0xc8] sm:$0xff] }
  0x50   :  { %1797 = vmatprep.subr.bf16.mxu0 %v1796_v15  ;;  %v1812_v15 = vpack.c.bf16 %v302_v13, %v299_v12  ;;  %v537_v12 = vld [vmem:[%s3324_s9 + $0x88] sm:$0xff] }
  0x51   :  { %v1887_v13 = vpack.c.bf16 %v537_v12, %v536_v11  ;;  %v551_v11 = vld [vmem:[%s3324_s9 + $0xf8] sm:$0xff] }
  0x52   :  { %1871 = vmatpush1.bf16.msra.mxu1 %v1870_v39  ;;  %v1828_v39 = vpack.c.bf16 %v326_v37, %v323_v36  ;;  %v522_v36 = vld [vmem:[%s3324_s9 + $0x10] sm:$0xff]  ;;  %v523_v37 = vld [vmem:[%s3324_s9 + $0x18] sm:$0xff] }
  0x53   :  { %1872 = vmatprep.subr.bf16.mxu1 %v2116_v3  ;;  %v1893_v40 = vpack.c.bf16 %v523_v37, %v522_v36  ;;  %v709_v36 = vld [vmem:[%s3326_s11] sm:$0xff]  ;;  %v711_v37 = vld [vmem:[%s3326_s11 + $0x10] sm:$0xff] }
  0x56   :  { %1874 = vmatpush1.bf16.msra.mxu1 %v1873_v42  ;;  %v329_v42 = vld [vmem:[%s3358_s6 + $0x1b8] sm:$0xff] }
  0x57   :  { %1875 = vmatprep.subr.bf16.mxu1 %v2116_v3 }
  0x5a   :  { %1877 = vmatpush1.bf16.msra.mxu1 %v1876_v45  ;;  %v1832_v45 = vpack.c.bf16 %v332_v43, %v329_v42  ;;  %v524_v42 = vld [vmem:[%s3324_s9 + $0x20] sm:$0xff]  ;;  %v525_v43 = vld [vmem:[%s3324_s9 + $0x28] sm:$0xff] }
  0x5b   :  { %1878 = vmatprep.subr.bf16.mxu1 %v2116_v3  ;;  %v1897_v46 = vpack.c.bf16 %v525_v43, %v524_v42 }
  0x5e   :  { %1880 = vmatpush1.bf16.msra.mxu1 %v1879_v48  ;;  %v335_v48 = vld [vmem:[%s3358_s6 + $0x1e8] sm:$0xff] }
  0x5f   :  { %1881 = vmatprep.subr.bf16.mxu1 %v2116_v3 }
  0x62   :  { %1883 = vmatpush1.bf16.msra.mxu1 %v1882_v51  ;;  %v1836_v51 = vpack.c.bf16 %v338_v49, %v335_v48  ;;  %v526_v48 = vld [vmem:[%s3324_s9 + $0x30] sm:$0xff]  ;;  %v527_v49 = vld [vmem:[%s3324_s9 + $0x38] sm:$0xff] }
  0x63   :  { %1884 = vmatprep.subr.bf16.mxu1 %v2116_v3 }
  0x66   :  { %1886 = vmatpush1.bf16.msra.mxu1 %v1885_v7  ;;  %v554_v7 = vld [vmem:[%s3324_s9 + $0x110] sm:$0xff] }
  0x67   :  { %499 = vmatprep.subr.mxu1 %v2118_v6 }
  0x6a   :  { %500 = vmatpush1.msra.mxu1 %v354_v10  ;;  %v550_v10 = vld [vmem:[%s3324_s9 + $0xf0] sm:$0xff] }
  0x6b   :  { %1919 = vmatprep.subr.bf16.mxu1 %v2116_v3  ;;  %v1915_v12 = vpack.c.bf16 %v551_v11, %v550_v10 }
 0x105   :  { %v152_v60 = vpop.f32.mrb[0].mxu0 }
 0x106   :  { %156 = vst [vmem:[%s3334_s19] sm:$0x3] %v152_v60  ;;  %v1637_v63 = vpop.f32.mrb[1].mxu0  ;;  %266 = vmatmul.mubr.f32.vlgmr.msra.gmra.mrb[2].mxu0 %v152_v60  ;;  %v1842_v60 = vpack.c.bf16 %v343_v59, %v340_v58 }
 0x107   :  { %1799 = vmatpush1.bf16.msra.mxu0 %v1798_v56  ;;  %v1838_v56 = vpack.c.bf16 %v337_v53, %v334_v52  ;;  %v1844_v63 = vpack.c.bf16 %v350_v62, %v347_v61  ;;  %v1901_v52 = vpack.c.bf16 %v527_v49, %v526_v48  ;;  %v531_v61 = vld [vmem:[%s3324_s9 + $0x58] sm:$0xff]  ;;  %v548_v62 = vld [vmem:[%s3324_s9 + $0xe0] sm:$0xff]  ;;  %v804_v49 = vld [vmem:[%s3328_s13 + $0x10] sm:$0xff] }
 0x108   :  { %1801 = vmatprep.subr.bf16.mxu0 %v1800_v57  ;;  %v1840_v57 = vpack.c.bf16 %v344_v55, %v341_v54  ;;  %v528_v54 = vld [vmem:[%s3324_s9 + $0x40] sm:$0xff]  ;;  %v529_v55 = vld [vmem:[%s3324_s9 + $0x48] sm:$0xff] }
 0x109   :  { %v1905_v58 = vpack.c.bf16 %v529_v55, %v528_v54  ;;  %v802_v48 = vld [vmem:[%s3328_s13] sm:$0xff] }
 0x10b   :  { %1803 = vmatpush1.bf16.msra.mxu0 %v1802_v0  ;;  %v346_v0 = vld [vmem:[%s3358_s6 + $0x240] sm:$0xff] }
 0x10c   :  { %1805 = vmatprep.subr.bf16.mxu0 %v1804_v1  ;;  %v349_v1 = vld [vmem:[%s3358_s6 + $0x258] sm:$0xff] }
 0x10d   :  { %v1846_v4 = vpack.c.bf16 %v349_v1, %v346_v0 }
 0x10f   :  { %1807 = vmatpush1.bf16.msra.mxu0 %v1806_v8  ;;  %v353_v8 = vld [vmem:[%s3358_s6 + $0x278] sm:$0xff] }
 0x110   :  { %1809 = vmatprep.subr.bf16.mxu0 %v1808_v9  ;;  %v352_v9 = vld [vmem:[%s3358_s6 + $0x270] sm:$0xff] }
 0x113   :  { %1811 = vmatpush1.bf16.msra.mxu0 %v1810_v14  ;;  %v191_v14 = vlaneseq }
 0x114   :  { %1813 = vmatprep.subr.bf16.mxu0 %v1812_v15 }
 0x115   :  { %v2671_v15 = vshrl.u32 %v191_v14, 7  ;;  %v535_v14 = vld [vmem:[%s3324_s9 + $0x78] sm:$0xff] }
 0x117   :  { %1815 = vmatpush1.bf16.msra.mxu0 %v1814_v20  ;;  %v2674_v16 = vsub.s32 0, %v2671_v15  ;;  %v2680_v18 = vsub.s32 1, %v2671_v15 }
 0x118   :  { %1817 = vmatprep.subr.bf16.mxu0 %v1816_v21 }
 0x119   :  { %v194_v19 = vrot.slane %v189_v17, %v2674_v16  ;;  %v198_v20 = vrot.slane %v189_v17, %v2680_v18 }
 0x11b   :  { %1819 = vmatpush1.bf16.msra.mxu0 %v1818_v26  ;;  %v552_v26 = vld [vmem:[%s3324_s9 + $0x100] sm:$0xff] }
 0x11c   :  { %1821 = vmatprep.subr.bf16.mxu0 %v1820_v27  ;;  %v553_v27 = vld [vmem:[%s3324_s9 + $0x108] sm:$0xff] }
 0x11f   :  { %1823 = vmatpush1.bf16.msra.mxu0 %v1822_v32  ;;  %v1889_v32 = vpack.c.bf16 %v521_v25, %v520_v22 }
 0x120   :  { %1825 = vmatprep.subr.bf16.mxu0 %v1824_v33  ;;  %v1920_v33 = vpack.c.bf16 %v553_v27, %v552_v26 }
 0x123   :  { %1827 = vmatpush1.bf16.msra.mxu0 %v1826_v38  ;;  %v540_v38 = vld [vmem:[%s3324_s9 + $0xa0] sm:$0xff] }
 0x124   :  { %1829 = vmatprep.subr.bf16.mxu0 %v1828_v39  ;;  %v541_v39 = vld [vmem:[%s3324_s9 + $0xa8] sm:$0xff] }
 0x125   :  { %v1895_v41 = vpack.c.bf16 %v541_v39, %v540_v38  ;;  %v1927_v38 = vpack.c.bf16 %v711_v37, %v709_v36  ;;  %v803_v39 = vld [vmem:[%s3328_s13 + $0x8] sm:$0xff] }
 0x127   :  { %1831 = vmatpush1.bf16.msra.mxu0 %v1830_v44  ;;  %v542_v44 = vld [vmem:[%s3324_s9 + $0xb0] sm:$0xff] }
 0x128   :  { %1833 = vmatprep.subr.bf16.mxu0 %v1832_v45  ;;  %v543_v45 = vld [vmem:[%s3324_s9 + $0xb8] sm:$0xff] }
 0x129   :  { %v1899_v47 = vpack.c.bf16 %v543_v45, %v542_v44  ;;  %v1487_v45 = vld [vmem:[%s3325_s10] ss:$0 sm:$0xff] }
 0x12b   :  { %1835 = vmatpush1.bf16.msra.mxu0 %v1834_v50  ;;  %v544_v50 = vld [vmem:[%s3324_s9 + $0xc0] sm:$0xff] }
 0x12c   :  { %1837 = vmatprep.subr.bf16.mxu0 %v1836_v51  ;;  %v545_v51 = vld [vmem:[%s3324_s9 + $0xc8] sm:$0xff] }
 0x12d   :  { %v1903_v53 = vpack.c.bf16 %v545_v51, %v544_v50  ;;  %v807_v50 = vld [vmem:[%s3328_s13 + $0x28] sm:$0xff]  ;;  %v809_v51 = vld [vmem:[%s3328_s13 + $0x38] sm:$0xff] }
 0x12e   :  { %v1933_v55 = vpack.c.bf16 %v809_v51, %v807_v50  ;;  %v842_v50 = vld [vmem:[%s3328_s13 + $0x140] sm:$0xff]  ;;  %v844_v51 = vld [vmem:[%s3328_s13 + $0x150] sm:$0xff] }
 0x12f   :  { %1839 = vmatpush1.bf16.msra.mxu0 %v1838_v56  ;;  %v546_v56 = vld [vmem:[%s3324_s9 + $0xd0] sm:$0xff] }
 0x130   :  { %1841 = vmatprep.subr.bf16.mxu0 %v1840_v57  ;;  %v547_v57 = vld [vmem:[%s3324_s9 + $0xd8] sm:$0xff] }
 0x131   :  { %v1907_v59 = vpack.c.bf16 %v547_v57, %v546_v56  ;;  %v806_v56 = vld [vmem:[%s3328_s13 + $0x20] sm:$0xff]  ;;  %v808_v57 = vld [vmem:[%s3328_s13 + $0x30] sm:$0xff] }
 0x133   :  { %1843 = vmatpush1.bf16.msra.mxu0 %v1842_v60  ;;  %v530_v60 = vld [vmem:[%s3324_s9 + $0x50] sm:$0xff] }
 0x134   :  { %1845 = vmatprep.subr.bf16.mxu0 %v1844_v63  ;;  %v549_v63 = vld [vmem:[%s3324_s9 + $0xe8] sm:$0xff]  ;;  %v1909_v0 = vpack.c.bf16 %v531_v61, %v530_v60  ;;  %v1935_v60 = vpack.c.bf16 %v808_v57, %v806_v56  ;;  %v846_v56 = vld [vmem:[%s3328_s13 + $0x160] sm:$0xff]  ;;  %v848_v57 = vld [vmem:[%s3328_s13 + $0x170] sm:$0xff] }
 0x135   :  { %v1911_v1 = vpack.c.bf16 %v549_v63, %v548_v62  ;;  %v810_v62 = vld [vmem:[%s3328_s13 + $0x40] sm:$0xff]  ;;  %v812_v63 = vld [vmem:[%s3328_s13 + $0x50] sm:$0xff] }
 0x137   :  { %1847 = vmatpush1.bf16.msra.mxu0 %v1846_v4  ;;  %v533_v4 = vld [vmem:[%s3324_s9 + $0x68] sm:$0xff] }
 0x138   :  { %428 = vmatprep.subr.mxu0 %v353_v8  ;;  %v1913_v5 = vpack.c.bf16 %v533_v4, %v532_v2  ;;  %v555_v8 = vld [vmem:[%s3324_s9 + $0x118] sm:$0xff]  ;;  %v1939_v2 = vpack.c.bf16 %v812_v63, %v810_v62  ;;  %v850_v62 = vld [vmem:[%s3328_s13 + $0x180] sm:$0xff]  ;;  %v852_v63 = vld [vmem:[%s3328_s13 + $0x190] sm:$0xff] }
 0x13b   :  { %429 = vmatpush1.msra.mxu0 %v352_v9  ;;  %v1923_v9 = vpack.c.bf16 %v555_v8, %v554_v7  ;;  %v816_v7 = vld [vmem:[%s3328_s13 + $0x70] sm:$0xff]  ;;  %v819_v8 = vld [vmem:[%s3328_s13 + $0x88] sm:$0xff] }
 0x13c   :  { %1888 = vmatprep.subr.bf16.mxu0 %v1887_v13  ;;  %v534_v13 = vld [vmem:[%s3324_s9 + $0x70] sm:$0xff] }
 0x13d   :  { %v1917_v17 = vpack.c.bf16 %v535_v14, %v534_v13  ;;  %v820_v13 = vld [vmem:[%s3328_s13 + $0x90] sm:$0xff]  ;;  %v823_v14 = vld [vmem:[%s3328_s13 + $0xa8] sm:$0xff] }
 0x1d9   :  { %v267_v21 = vpop.f32.mrb[2].mxu0 }
 0x1da   :  { %v268_v23 = vadd.f32 %v267_v21, %v194_v19  ;;  %v269_v24 = vpop.f32.mrb[3].mxu0  ;;  %v367_v19 = vsub.s32 2, %v2671_v15 }
 0x1db   :  { %v270_v28 = vadd.f32 %v269_v24, %v198_v20  ;;  %v355_v20 = vld [vmem:[%s3360_s28] sm:$0x7]  ;;  %s3362_s28 = sld [smem:[#allocation8_spill]] }
 0x1dc   :  { %v272_v34 = vmax.f32 %v268_v23, 0.0  ;;  %v360_v21 = vrot.slane %v355_v20, %v2674_v16  ;;  %v368_v22 = vrot.slane %v355_v20, %v367_v19  ;;  %v364_v23 = vrot.slane %v355_v20, %v2680_v18 }
 0x1dd   :  { %v273_v31 = vmax.f32 %v270_v28, 0.0 }
 0x1df   :  { %1485 = vmatprep.mubr.msk.f32.mxu0 %vm372_vm1, %v273_v31  ;;  %1486 = vmatprep.mubr.msk.f32.mxu1 %vm372_vm1, %v273_v31 }
 0x1e0   :  { %441 = vmatmul.mubr.f32.vlgmr.msra.gmra.mrb[4].mxu0 %v272_v34  ;;  %512 = vmatmul.mubr.f32.vlgmr.msra.gmra.mrb[0].mxu1 %v272_v34  ;;  %v712_v34 = vld [vmem:[%s3326_s11 + $0x18] sm:$0xff] }
 0x1e1   :  { %1890 = vmatpush3.bf16.msra.mxu0 %v1889_v32  ;;  %1921 = vmatpush3.bf16.msra.mxu1 %v1920_v33  ;;  %v710_v33 = vld [vmem:[%s3326_s11 + $0x8] sm:$0xff] }
 0x1e2   :  { %1892 = vmatprep.subr.bf16.mxu0 %v1891_v35  ;;  %1922 = vmatprep.subr.bf16.mxu1 %v2116_v3  ;;  %v1925_v35 = vpack.c.bf16 %v712_v34, %v710_v33  ;;  %v832_v33 = vld [vmem:[%s3328_s13 + $0xf0] sm:$0xff]  ;;  %v835_v34 = vld [vmem:[%s3328_s13 + $0x108] sm:$0xff] }
 0x1e3   :  { %1646 = vmatprep.mubr.msk.f32.mxu1 %vm2117_vm0, %v2118_v6 }
 0x1e5   :  { %1894 = vmatpush3.bf16.msra.mxu0 %v1893_v40  ;;  %1924 = vmatpush3.bf16.msra.mxu1 %v1923_v9  ;;  %v805_v40 = vld [vmem:[%s3328_s13 + $0x18] sm:$0xff] }
 0x1e6   :  { %1896 = vmatprep.subr.bf16.mxu0 %v1895_v41  ;;  %1926 = vmatprep.subr.bf16.mxu1 %v1925_v35  ;;  %v1929_v41 = vpack.c.bf16 %v805_v40, %v803_v39  ;;  %v821_v9 = vld [vmem:[%s3328_s13 + $0x98] sm:$0xff]  ;;  %v836_v39 = vld [vmem:[%s3328_s13 + $0x110] sm:$0xff]  ;;  %v839_v40 = vld [vmem:[%s3328_s13 + $0x128] sm:$0xff] }
 0x1e7   :  { %v1945_v11 = vpack.c.bf16 %v821_v9, %v819_v8  ;;  %v837_v35 = vld [vmem:[%s3328_s13 + $0x118] sm:$0xff] }
 0x1e8   :  { %v1961_v37 = vpack.c.bf16 %v837_v35, %v835_v34  ;;  %v947_v9 = vld [vmem:[%s3330_s15 + $0x18] sm:$0xff] }
 0x1e9   :  { %1898 = vmatpush3.bf16.msra.mxu0 %v1897_v46 }
 0x1ea   :  { %1900 = vmatprep.subr.bf16.mxu0 %v1899_v47 }
 0x1ed   :  { %1902 = vmatpush3.bf16.msra.mxu0 %v1901_v52 }
 0x1ee   :  { %1904 = vmatprep.subr.bf16.mxu0 %v1903_v53  ;;  %v1931_v53 = vpack.c.bf16 %v804_v49, %v802_v48 }
 0x1f1   :  { %1906 = vmatpush3.bf16.msra.mxu0 %v1905_v58  ;;  %v811_v58 = vld [vmem:[%s3328_s13 + $0x48] sm:$0xff] }
 0x1f2   :  { %1908 = vmatprep.subr.bf16.mxu0 %v1907_v59  ;;  %v813_v59 = vld [vmem:[%s3328_s13 + $0x58] sm:$0xff] }
 0x1f3   :  { %v1937_v61 = vpack.c.bf16 %v813_v59, %v811_v58  ;;  %v1975_v58 = vpack.c.bf16 %v848_v57, %v846_v56  ;;  %v851_v59 = vld [vmem:[%s3328_s13 + $0x188] sm:$0xff]  ;;  %v1156_v56 = vld [vmem:[%s3361_s26 + $0x50] sm:$0xff]  ;;  %v1157_v57 = vld [vmem:[%s3361_s26 + $0x58] sm:$0xff] }
 0x1f5   :  { %1910 = vmatpush3.bf16.msra.mxu0 %v1909_v0  ;;  %v815_v0 = vld [vmem:[%s3328_s13 + $0x68] sm:$0xff] }
 0x1f6   :  { %1912 = vmatprep.subr.bf16.mxu0 %v1911_v1  ;;  %v817_v1 = vld [vmem:[%s3328_s13 + $0x78] sm:$0xff] }
 0x1f7   :  { %v1941_v4 = vpack.c.bf16 %v817_v1, %v815_v0  ;;  %v1979_v0 = vpack.c.bf16 %v852_v63, %v850_v62  ;;  %v855_v1 = vld [vmem:[%s3328_s13 + $0x1a8] sm:$0xff]  ;;  %v856_v62 = vld [vmem:[%s3329_s14] sm:$0x3] }
 0x1f8   :  { %v861_v63 = vrot.slane %v856_v62, %v2674_v16 }
 0x1f9   :  { %1914 = vmatpush3.bf16.msra.mxu0 %v1913_v5  ;;  %v814_v5 = vld [vmem:[%s3328_s13 + $0x60] sm:$0xff] }
 0x1fa   :  { %1916 = vmatprep.subr.bf16.mxu0 %v1915_v12  ;;  %v1943_v10 = vpack.c.bf16 %v816_v7, %v814_v5  ;;  %v818_v12 = vld [vmem:[%s3328_s13 + $0x80] sm:$0xff]  ;;  %v945_v5 = vld [vmem:[%s3330_s15 + $0x8] sm:$0xff]  ;;  %v946_v7 = vld [vmem:[%s3330_s15 + $0x10] sm:$0xff] }
 0x1fb   :  { %v1947_v19 = vpack.c.bf16 %v820_v13, %v818_v12  ;;  %v949_v12 = vld [vmem:[%s3330_s15 + $0x28] sm:$0xff] }
 0x1fd   :  { %1918 = vmatpush3.bf16.msra.mxu0 %v1917_v17  ;;  %v825_v17 = vld [vmem:[%s3328_s13 + $0xb8] sm:$0xff] }
 0x1fe   :  { %1981 = vmatprep.subr.bf16.mxu0 %v2116_v3  ;;  %v1949_v20 = vpack.c.bf16 %v825_v17, %v823_v14  ;;  %v950_v14 = vld [vmem:[%s3330_s15 + $0x30] sm:$0xff]  ;;  %v951_v17 = vld [vmem:[%s3330_s15 + $0x38] sm:$0xff] }
 0x2b3   :  { %v442_v24 = vpop.f32.mrb[4].mxu0  ;;  %v513_v25 = vpop.f32.mrb[0].mxu1 }
 0x2b4   :  { %v443_v26 = vadd.f32 %v442_v24, %v360_v21  ;;  %v514_v27 = vadd.f32 %v513_v25, %v368_v22  ;;  %v444_v28 = vpop.f32.mrb[5].mxu0  ;;  %v515_v29 = vpop.f32.mrb[1].mxu1  ;;  %v822_v21 = vld [vmem:[%s3328_s13 + $0xa0] sm:$0xff]  ;;  %v824_v22 = vld [vmem:[%s3328_s13 + $0xb0] sm:$0xff]  ;;  %v829_v24 = vld [vmem:[%s3328_s13 + $0xd8] sm:$0xff] }
 0x2b5   :  { %v445_v30 = vadd.f32 %v444_v28, %v364_v23  ;;  %v827_v23 = vld [vmem:[%s3328_s13 + $0xc8] sm:$0xff]  ;;  %v1951_v25 = vpack.c.bf16 %v824_v22, %v822_v21  ;;  %v828_v28 = vld [vmem:[%s3328_s13 + $0xd0] sm:$0xff] }
 0x2b6   :  { %v519_v31 = vmax.f32 %v514_v27, 0.0  ;;  %v517_v15 = vmax.f32 %v443_v26, 0.0  ;;  %v1953_v26 = vpack.c.bf16 %v829_v24, %v827_v23  ;;  %v826_v27 = vld [vmem:[%s3328_s13 + $0xc0] sm:$0xff]  ;;  %v831_v29 = vld [vmem:[%s3328_s13 + $0xe8] sm:$0xff]  ;;  %v954_v23 = vld [vmem:[%s3330_s15 + $0x50] sm:$0xff] }
 0x2b7   :  { %v518_v32 = vmax.f32 %v445_v30, 0.0  ;;  %v833_v30 = vld [vmem:[%s3328_s13 + $0xf8] sm:$0xff]  ;;  %v953_v21 = vld [vmem:[%s3330_s15 + $0x48] sm:$0xff] }
 0x2b8   :  { %1647 = vmatmul.mubr.msk.f32.vlgmr.msra.gmra.mrb[2].mxu1 %vm563_vm2, %v519_v31  ;;  %v1955_v31 = vpack.c.bf16 %v828_v28, %v826_v27  ;;  %v955_v24 = vld [vmem:[%s3330_s15 + $0x58] sm:$0xff]  ;;  %v957_v27 = vld [vmem:[%s3330_s15 + $0x68] sm:$0xff] }
 0x2b9   :  { %631 = vmatprep.mubr.f32.mxu0 %v518_v32  ;;  %793 = vmatprep.mubr.f32.mxu1 %v2118_v6  ;;  %v1957_v32 = vpack.c.bf16 %v833_v30, %v831_v29  ;;  %v713_v29 = vld [vmem:[%s3327_s12] sm:$0x3] }
 0x2ba   :  { %632 = vmatmul.mubr.f32.vlgmr.msra.gmra.mrb[6].mxu0 %v517_v15  ;;  %1928 = vmatpush1.bf16.msra.mxu1 %v1927_v38  ;;  %v830_v15 = vld [vmem:[%s3328_s13 + $0xe0] sm:$0xff]  ;;  %v718_v30 = vrot.slane %v713_v29, %v2674_v16 }
 0x2bb   :  { %1930 = vmatprep.subr.bf16.mxu1 %v1929_v41  ;;  %v1959_v36 = vpack.c.bf16 %v832_v33, %v830_v15  ;;  %v834_v38 = vld [vmem:[%s3328_s13 + $0x100] sm:$0xff]  ;;  %v841_v41 = vld [vmem:[%s3328_s13 + $0x138] sm:$0xff] }
 0x38b   :  { %v703_v42 = vpop.f32.mrb[2].mxu1 }
 0x38c   :  { %v1648_v43 = vpop.f32.mrb[3].mxu1 }
 0x38d   :  { %v1546_v44 = vpop.f32.mrb[6].mxu0  ;;  %v1965_v43 = vpack.c.bf16 %v841_v41, %v839_v40  ;;  %v960_v40 = vld [vmem:[%s3330_s15 + $0x80] sm:$0x7f] }
 0x38e   :  { %v1547_v46 = vpop.f32.mrb[7].mxu0  ;;  %v1146_v41 = vld [vmem:[%s3361_s26] sm:$0xff] }
 0x38f   :  { %v1548_v47 = vadd.f32 %v1547_v46, %v1546_v44  ;;  %v838_v44 = vld [vmem:[%s3328_s13 + $0x120] sm:$0xff]  ;;  %v843_v46 = vld [vmem:[%s3328_s13 + $0x148] sm:$0xff] }
 0x391   :  { %v634_v52 = vadd.f32 %v1548_v47, %v1487_v45  ;;  %v840_v45 = vld [vmem:[%s3328_s13 + $0x130] sm:$0xff]  ;;  %v845_v47 = vld [vmem:[%s3328_s13 + $0x158] sm:$0xff] }
 0x392   :  { %v1967_v48 = vpack.c.bf16 %v840_v45, %v838_v44  ;;  %v1969_v49 = vpack.c.bf16 %v845_v47, %v843_v46  ;;  %v1149_v45 = vld [vmem:[%s3361_s26 + $0x18] sm:$0xff]  ;;  %v1150_v47 = vld [vmem:[%s3361_s26 + $0x20] sm:$0xff] }
 0x393   :  { %v704_v54 = vadd.f32 %v703_v42, %v634_v52  ;;  %v1963_v42 = vpack.c.bf16 %v836_v39, %v834_v38  ;;  %v847_v52 = vld [vmem:[%s3328_s13 + $0x168] sm:$0xff]  ;;  %v959_v38 = vld [vmem:[%s3330_s15 + $0x78] sm:$0xff] }
 0x395   :  { %708 = vst.msk [vmem:[%s3335_s20] sm:$0x3] %vm707_vm3, %v704_v54  ;;  %1489 = vmatmul.mubr.msk.f32.vlgmr.msra.gmra.mrb[4].mxu1 %vm725_vm4, %v704_v54  ;;  %v1971_v54 = vpack.c.bf16 %v844_v51, %v842_v50  ;;  %v1152_v50 = vld [vmem:[%s3361_s26 + $0x30] sm:$0xff]  ;;  %v1153_v51 = vld [vmem:[%s3361_s26 + $0x38] sm:$0xff] }
 0x396   :  { %1932 = vmatpush1.bf16.msra.mxu1 %v1931_v53  ;;  %v849_v53 = vld [vmem:[%s3328_s13 + $0x178] sm:$0xff] }
 0x397   :  { %1934 = vmatprep.subr.bf16.mxu1 %v1933_v55  ;;  %v1973_v55 = vpack.c.bf16 %v849_v53, %v847_v52  ;;  %v2039_v52 = vpack.c.bf16 %v1153_v51, %v1152_v50  ;;  %v1154_v53 = vld [vmem:[%s3361_s26 + $0x40] sm:$0xff]  ;;  %v1280_v50 = vld [vmem:[%s3362_s28 + $0x30] sm:$0xff]  ;;  %v1281_v51 = vld [vmem:[%s3362_s28 + $0x38] sm:$0xff] }
 0x39a   :  { %1936 = vmatpush1.bf16.msra.mxu1 %v1935_v60  ;;  %v853_v60 = vld [vmem:[%s3328_s13 + $0x198] sm:$0xff] }
 0x39b   :  { %1938 = vmatprep.subr.bf16.mxu1 %v1937_v61  ;;  %v1977_v61 = vpack.c.bf16 %v853_v60, %v851_v59  ;;  %v1158_v59 = vld [vmem:[%s3361_s26 + $0x60] sm:$0xff]  ;;  %v1159_v60 = vld [vmem:[%s3361_s26 + $0x68] sm:$0xff] }
 0x39e   :  { %1940 = vmatpush1.bf16.msra.mxu1 %v1939_v2  ;;  %v854_v2 = vld [vmem:[%s3328_s13 + $0x1a0] sm:$0xff] }
 0x39f   :  { %1942 = vmatprep.subr.bf16.mxu1 %v1941_v4  ;;  %v944_v4 = vld [vmem:[%s3330_s15] sm:$0xff] }
 0x3a0   :  { %v1982_v8 = vpack.c.bf16 %v945_v5, %v944_v4  ;;  %v1046_v5 = vld [vmem:[%s3332_s17] sm:$0xff] }
 0x3a2   :  { %1944 = vmatpush1.bf16.msra.mxu1 %v1943_v10  ;;  %1983 = vmatpush1.bf16.msra.mxu0 %v1982_v8  ;;  %v1985_v10 = vpack.c.bf16 %v947_v9, %v946_v7  ;;  %v1047_v7 = vld [vmem:[%s3332_s17 + $0x8] sm:$0xff] }
 0x3a3   :  { %1946 = vmatprep.subr.bf16.mxu1 %v1945_v11  ;;  %1984 = vmatprep.subr.bf16.mxu0 %v2116_v3  ;;  %v948_v11 = vld [vmem:[%s3330_s15 + $0x20] sm:$0xff] }
 0x3a4   :  { %v1988_v13 = vpack.c.bf16 %v949_v12, %v948_v11  ;;  %v1048_v12 = vld [vmem:[%s3332_s17 + $0x10] sm:$0xff] }
 0x3a6   :  { %1948 = vmatpush1.bf16.msra.mxu1 %v1947_v19  ;;  %1986 = vmatpush1.bf16.msra.mxu0 %v1985_v10  ;;  %v1991_v19 = vpack.c.bf16 %v951_v17, %v950_v14  ;;  %v2006_v10 = vpack.c.bf16 %v1047_v7, %v1046_v5  ;;  %v1050_v17 = vld [vmem:[%s3332_s17 + $0x20] sm:$0xff]  ;;  %v1289_v5 = vld [vmem:[%s3362_s28 + $0x78] sm:$0xff] }
 0x3a7   :  { %1950 = vmatprep.subr.bf16.mxu1 %v1949_v20  ;;  %1987 = vmatprep.subr.bf16.mxu0 %v2116_v3  ;;  %v952_v20 = vld [vmem:[%s3330_s15 + $0x40] sm:$0xff] }
 0x3a8   :  { %v1994_v22 = vpack.c.bf16 %v953_v21, %v952_v20  ;;  %v1052_v21 = vld [vmem:[%s3332_s17 + $0x30] sm:$0xff] }
 0x3aa   :  { %1952 = vmatpush1.bf16.msra.mxu1 %v1951_v25  ;;  %1989 = vmatpush1.bf16.msra.mxu0 %v1988_v13  ;;  %v1997_v25 = vpack.c.bf16 %v955_v24, %v954_v23  ;;  %v1049_v13 = vld [vmem:[%s3332_s17 + $0x18] sm:$0xff]  ;;  %v1054_v24 = vld [vmem:[%s3332_s17 + $0x40] sm:$0xff] }
 0x3ab   :  { %1954 = vmatprep.subr.bf16.mxu1 %v1953_v26  ;;  %1990 = vmatprep.subr.bf16.mxu0 %v2116_v3  ;;  %v956_v26 = vld [vmem:[%s3330_s15 + $0x60] sm:$0xff]  ;;  %v2009_v14 = vpack.c.bf16 %v1049_v13, %v1048_v12 }
 0x3ac   :  { %v2000_v28 = vpack.c.bf16 %v957_v27, %v956_v26  ;;  %v1056_v27 = vld [vmem:[%s3332_s17 + $0x50] sm:$0xff] }
 0x3ae   :  { %1956 = vmatpush1.bf16.msra.mxu1 %v1955_v31  ;;  %1992 = vmatpush1.bf16.msra.mxu0 %v1991_v19  ;;  %v722_v31 = vrot.slane %v713_v29, %v2680_v18  ;;  %v1051_v19 = vld [vmem:[%s3332_s17 + $0x28] sm:$0xff] }
 0x3af   :  { %1958 = vmatprep.subr.bf16.mxu1 %v1957_v32  ;;  %1993 = vmatprep.subr.bf16.mxu0 %v2116_v3  ;;  %v2012_v20 = vpack.c.bf16 %v1051_v19, %v1050_v17 }
 0x3b2   :  { %1960 = vmatpush1.bf16.msra.mxu1 %v1959_v36  ;;  %1995 = vmatpush1.bf16.msra.mxu0 %v1994_v22  ;;  %v1053_v22 = vld [vmem:[%s3332_s17 + $0x38] sm:$0xff] }
 0x3b3   :  { %1962 = vmatprep.subr.bf16.mxu1 %v1961_v37  ;;  %1996 = vmatprep.subr.bf16.mxu0 %v2116_v3  ;;  %v958_v37 = vld [vmem:[%s3330_s15 + $0x70] sm:$0xff]  ;;  %v2015_v23 = vpack.c.bf16 %v1053_v22, %v1052_v21 }
 0x3b4   :  { %v2003_v39 = vpack.c.bf16 %v959_v38, %v958_v37  ;;  %v1161_v37 = vld [vmem:[%s3361_s26 + $0x78] sm:$0xff] }
 0x3b6   :  { %1964 = vmatpush1.bf16.msra.mxu1 %v1963_v42  ;;  %1998 = vmatpush1.bf16.msra.mxu0 %v1997_v25  ;;  %v1147_v42 = vld [vmem:[%s3361_s26 + $0x8] sm:$0xff] }
 0x3b7   :  { %1966 = vmatprep.subr.bf16.mxu1 %v1965_v43  ;;  %1999 = vmatprep.subr.bf16.mxu0 %v2116_v3  ;;  %v1148_v43 = vld [vmem:[%s3361_s26 + $0x10] sm:$0xff]  ;;  %v2030_v44 = vpack.c.bf16 %v1147_v42, %v1146_v41  ;;  %v1055_v25 = vld [vmem:[%s3332_s17 + $0x48] sm:$0xff]  ;;  %v1277_v42 = vld [vmem:[%s3362_s28 + $0x18] sm:$0xff] }
 0x3b8   :  { %v2033_v46 = vpack.c.bf16 %v1149_v45, %v1148_v43  ;;  %v2018_v26 = vpack.c.bf16 %v1055_v25, %v1054_v24  ;;  %v1276_v41 = vld [vmem:[%s3362_s28 + $0x10] sm:$0xff] }
 0x3ba   :  { %1968 = vmatpush1.bf16.msra.mxu1 %v1967_v48  ;;  %2001 = vmatpush1.bf16.msra.mxu0 %v2000_v28  ;;  %v1151_v48 = vld [vmem:[%s3361_s26 + $0x28] sm:$0xff]  ;;  %v1057_v28 = vld [vmem:[%s3332_s17 + $0x58] sm:$0xff] }
 0x3bb   :  { %1970 = vmatprep.subr.bf16.mxu1 %v1969_v49  ;;  %2002 = vmatprep.subr.bf16.mxu0 %v2116_v3  ;;  %v2036_v49 = vpack.c.bf16 %v1151_v48, %v1150_v47  ;;  %v2021_v29 = vpack.c.bf16 %v1057_v28, %v1056_v27  ;;  %v1278_v47 = vld [vmem:[%s3362_s28 + $0x20] sm:$0xff]  ;;  %v1279_v48 = vld [vmem:[%s3362_s28 + $0x28] sm:$0xff] }
 0x3be   :  { %1972 = vmatpush1.bf16.msra.mxu1 %v1971_v54  ;;  %2004 = vmatpush1.bf16.msra.mxu0 %v2003_v39  ;;  %v1155_v54 = vld [vmem:[%s3361_s26 + $0x48] sm:$0xff] }
 0x3bf   :  { %1974 = vmatprep.subr.bf16.mxu1 %v1973_v55  ;;  %1008 = vmatprep.subr.mxu0 %v2118_v6  ;;  %v2042_v55 = vpack.c.bf16 %v1155_v54, %v1154_v53  ;;  %v1282_v53 = vld [vmem:[%s3362_s28 + $0x40] sm:$0xff]  ;;  %v1283_v54 = vld [vmem:[%s3362_s28 + $0x48] sm:$0xff] }
 0x3c2   :  { %1976 = vmatpush1.bf16.msra.mxu1 %v1975_v58  ;;  %1492 = vmatpush1.msk.msra.mxu0 %vm972_vm5, %v960_v40  ;;  %v2045_v58 = vpack.c.bf16 %v1157_v57, %v1156_v56  ;;  %v1491_v40 = vld [vmem:[%s3331_s16] ss:$0 sm:$0xff]  ;;  %v1284_v56 = vld [vmem:[%s3362_s28 + $0x50] sm:$0xff]  ;;  %v1285_v57 = vld [vmem:[%s3362_s28 + $0x58] sm:$0xff]  ;;  %s3363_s16 = sld [smem:[#allocation9_spill]] }
 0x3c3   :  { %1978 = vmatprep.subr.bf16.mxu1 %v1977_v61  ;;  %2005 = vmatprep.subr.bf16.mxu0 %v2116_v3  ;;  %v2048_v61 = vpack.c.bf16 %v1159_v60, %v1158_v59  ;;  %v1286_v59 = vld [vmem:[%s3362_s28 + $0x60] sm:$0xff]  ;;  %v1287_v60 = vld [vmem:[%s3362_s28 + $0x68] sm:$0xff] }
 0x3c6   :  { %1980 = vmatpush1.bf16.msra.mxu1 %v1979_v0  ;;  %v865_v0 = vrot.slane %v856_v62, %v2680_v18  ;;  %v1494_v62 = vld [vmem:[%s3333_s18] ss:$0 sm:$0xff]  ;;  %s2119_s18 = smov 64  }
 0x3c7   :  { %923 = vmatprep.subr.mxu1 %v855_v1 }
 0x3c8   :  { %v1242_v12 = vld [vmem:[%s3363_s16] sm:$0xff]  ;;  %v1243_v13 = vld [vmem:[%s3363_s16 + $0x8] sm:$0xff]  ;;  %v1244_v17 = vld [vmem:[%s3363_s16 + $0x10] sm:$0xff] }
 0x3c9   :  { %v1245_v22 = vld [vmem:[%s3363_s16 + $0x18] sm:$0xff]  ;;  %v1247_v25 = vld [vmem:[%s3363_s16 + $0x28] sm:$0xff] }
 0x3ca   :  { %924 = vmatpush1.msra.mxu1 %v854_v2 }
 0x3cb   :  { %2029 = vmatprep.subr.bf16.mxu1 %v2116_v3 }
 0x468   :  { %v795_v32 = vpop.f32.mrb[4].mxu1 }
 0x469   :  { %v796_v15 = vadd.f32 %v795_v32, %v718_v30  ;;  %v797_v33 = vpop.f32.mrb[5].mxu1  ;;  %v1058_v30 = vld [vmem:[%s3332_s17 + $0x60] sm:$0xff] }
 0x46a   :  { %v798_v34 = vadd.f32 %v797_v33, %v722_v31  ;;  %v1059_v31 = vld [vmem:[%s3332_s17 + $0x68] sm:$0xff]  ;;  %v1061_v33 = vld [vmem:[%s3332_s17 + $0x78] sm:$0xff] }
 0x46b   :  { %v800_v36 = vmax.f32 %v796_v15, 0.0  ;;  %v2024_v32 = vpack.c.bf16 %v1059_v31, %v1058_v30  ;;  %v1060_v15 = vld [vmem:[%s3332_s17 + $0x70] sm:$0xff]  ;;  %v1249_v30 = vld [vmem:[%s3363_s16 + $0x38] sm:$0xff] }
 0x46c   :  { %v801_v35 = vmax.f32 %v798_v34, 0.0  ;;  %v2027_v34 = vpack.c.bf16 %v1061_v33, %v1060_v15 }
 0x46e   :  { %1490 = vmatprep.mubr.msk.f32.mxu1 %vm372_vm1, %v801_v35  ;;  %v1062_v35 = vld [vmem:[%s3332_s17 + $0x80] sm:$0x7f]  ;;  %s2120_s17 = smov [#allocation2]  }
 0x46f   :  { %936 = vmatmul.mubr.f32.vlgmr.msra.gmra.mrb[6].mxu1 %v800_v36  ;;  %v1160_v36 = vld [vmem:[%s3361_s26 + $0x70] sm:$0xff]  ;;  %s1463_s29 = sshll.u32 %s2120_s17, 4  ;;  %s1464_s29 = int_to_ptr.vmem [resolvable:$true] %s1463_s29 }
 0x470   :  { %1681 = vmatprep.mubr.msk.f32.mxu1 %vm2117_vm0, %v2118_v6  ;;  %2031 = vmatpush3.bf16.msra.mxu1 %v2030_v44  ;;  %v2051_v38 = vpack.c.bf16 %v1161_v37, %v1160_v36  ;;  %s2092_s20 = scalar_lea.vmem %s1464_s29, 32  ;;  %p2097_p1 = scmp.lt.s32.totalorder %s1464_s29, %s1464_s29 }
 0x471   :  { %2032 = vmatprep.subr.bf16.mxu1 %v2116_v3  ;;  %p2093_p0 = scmp.ne.s32.totalorder %s1464_s29, %s2092_s20  ;;  %p2098_p2 = scmp.lt.s32.totalorder %s2092_s20, %s2092_s20 }
 0x473   :  { %p2099_p3 = por %p2098_p2, %p2097_p1 }
 0x474   :  { %2034 = vmatpush3.bf16.msra.mxu1 %v2033_v46  ;;  %v2057_v46 = vpack.c.bf16 %v1277_v42, %v1276_v41 }
 0x475   :  { %2035 = vmatprep.subr.bf16.mxu1 %v2116_v3  ;;  %p2100_p4 = pnand %p2099_p3, %p2093_p0 }
 0x478   :  { %2037 = vmatpush3.bf16.msra.mxu1 %v2036_v49  ;;  %v2061_v49 = vpack.c.bf16 %v1279_v48, %v1278_v47 }
 0x479   :  { %2038 = vmatprep.subr.bf16.mxu1 %v2116_v3 }
 0x47c   :  { %2040 = vmatpush3.bf16.msra.mxu1 %v2039_v52  ;;  %v2065_v52 = vpack.c.bf16 %v1281_v51, %v1280_v50 }
 0x47d   :  { %2041 = vmatprep.subr.bf16.mxu1 %v2116_v3 }
 0x480   :  { %2043 = vmatpush3.bf16.msra.mxu1 %v2042_v55  ;;  %v2069_v55 = vpack.c.bf16 %v1283_v54, %v1282_v53 }
 0x481   :  { %2044 = vmatprep.subr.bf16.mxu1 %v2116_v3 }
 0x484   :  { %2046 = vmatpush3.bf16.msra.mxu1 %v2045_v58  ;;  %v2073_v58 = vpack.c.bf16 %v1285_v57, %v1284_v56 }
 0x485   :  { %2047 = vmatprep.subr.bf16.mxu1 %v2116_v3 }
 0x488   :  { %2049 = vmatpush3.bf16.msra.mxu1 %v2048_v61  ;;  %v2077_v61 = vpack.c.bf16 %v1287_v60, %v1286_v59 }
 0x489   :  { %2050 = vmatprep.subr.bf16.mxu1 %v2116_v3 }
 0x48c   :  { %2052 = vmatpush3.bf16.msra.mxu1 %v2051_v38 }
 0x542   :  { %v937_v1 = vpop.f32.mrb[6].mxu1 }
 0x543   :  { %v938_v2 = vadd.f32 %v937_v1, %v861_v63  ;;  %v939_v4 = vpop.f32.mrb[7].mxu1 }
 0x544   :  { %v940_v8 = vadd.f32 %v939_v4, %v865_v0  ;;  %v1288_v4 = vld [vmem:[%s3362_s28 + $0x70] sm:$0xff] }
 0x545   :  { %v942_v11 = vmax.f32 %v938_v2, 0.0 }
 0x546   :  { %v943_v9 = vmax.f32 %v940_v8, 0.0  ;;  %v2081_v8 = vpack.c.bf16 %v1289_v5, %v1288_v4 }
 0x548   :  { %1493 = vmatprep.mubr.msk.f32.mxu0 %vm968_vm6, %v943_v9 }
 0x549   :  { %1041 = vmatmul.mubr.f32.vlgmr.msra.gmra.mrb[8].mxu0 %v942_v11 }
 0x54a   :  { %2007 = vmatpush1.bf16.msra.mxu0 %v2006_v10  ;;  %1496 = vmatprep.mubr.msk.f32.mxu0 %vm968_vm6, %v943_v9 }
 0x54b   :  { %2008 = vmatprep.subr.bf16.mxu0 %v2116_v3 }
 0x54e   :  { %2010 = vmatpush1.bf16.msra.mxu0 %v2009_v14 }
 0x54f   :  { %2011 = vmatprep.subr.bf16.mxu0 %v2116_v3 }
 0x552   :  { %2013 = vmatpush1.bf16.msra.mxu0 %v2012_v20 }
 0x553   :  { %2014 = vmatprep.subr.bf16.mxu0 %v2116_v3 }
 0x556   :  { %2016 = vmatpush1.bf16.msra.mxu0 %v2015_v23  ;;  %v1246_v23 = vld [vmem:[%s3363_s16 + $0x20] sm:$0xff] }
 0x557   :  { %2017 = vmatprep.subr.bf16.mxu0 %v2116_v3 }
 0x55a   :  { %2019 = vmatpush1.bf16.msra.mxu0 %v2018_v26  ;;  %v1248_v26 = vld [vmem:[%s3363_s16 + $0x30] sm:$0xff] }
 0x55b   :  { %2020 = vmatprep.subr.bf16.mxu0 %v2116_v3 }
 0x55e   :  { %2022 = vmatpush1.bf16.msra.mxu0 %v2021_v29 }
 0x55f   :  { %2023 = vmatprep.subr.bf16.mxu0 %v2116_v3 }
 0x562   :  { %2025 = vmatpush1.bf16.msra.mxu0 %v2024_v32 }
 0x563   :  { %2026 = vmatprep.subr.bf16.mxu0 %v2116_v3  ;;  %v1274_v3 = vld [vmem:[%s3362_s28] sm:$0xff] }
 0x566   :  { %2028 = vmatpush1.bf16.msra.mxu0 %v2027_v34 }
 0x567   :  { %1105 = vmatprep.subr.mxu0 %v2118_v6  ;;  %v1275_v6 = vld [vmem:[%s3362_s28 + $0x8] sm:$0xff] }
 0x568   :  { %v2053_v39 = vpack.c.bf16 %v1275_v6, %v1274_v3 }
 0x56a   :  { %1495 = vmatpush1.msk.msra.mxu0 %vm972_vm5, %v1062_v35  ;;  %2054 = vmatprep.subr.bf16.mxu1 %v2053_v39 }
 0x56b   :  { %1138 = vmatmul.mubr.f32.vlgmr.msra.gmra.mrb[10].mxu0 %v942_v11 }
 0x61c   :  { %v1042_v43 = vpop.f32.mrb[8].mxu0 }
 0x61d   :  { %v1043_v44 = vadd.f32 %v1491_v40, %v1042_v43  ;;  %v1044_v45 = vpop.f32.mrb[9].mxu0 }
 0x61f   :  { %1143 = vst [vmem:[%s3336_s21] sm:$0x3] %v1043_v44  ;;  %1682 = vmatmul.mubr.f32.vlgmr.msra.gmra.mrb[8].mxu1 %v1043_v44 }
 0x620   :  { %2056 = vmatpush3.bf16.msra.mxu1 %v2053_v39 }
 0x621   :  { %2058 = vmatprep.subr.bf16.mxu1 %v2057_v46 }
 0x624   :  { %2060 = vmatpush3.bf16.msra.mxu1 %v2057_v46 }
 0x625   :  { %2062 = vmatprep.subr.bf16.mxu1 %v2061_v49 }
 0x628   :  { %2064 = vmatpush3.bf16.msra.mxu1 %v2061_v49 }
 0x629   :  { %2066 = vmatprep.subr.bf16.mxu1 %v2065_v52 }
 0x62c   :  { %2068 = vmatpush3.bf16.msra.mxu1 %v2065_v52 }
 0x62d   :  { %2070 = vmatprep.subr.bf16.mxu1 %v2069_v55 }
 0x630   :  { %2072 = vmatpush3.bf16.msra.mxu1 %v2069_v55 }
 0x631   :  { %2074 = vmatprep.subr.bf16.mxu1 %v2073_v58 }
 0x634   :  { %2076 = vmatpush3.bf16.msra.mxu1 %v2073_v58 }
 0x635   :  { %2078 = vmatprep.subr.bf16.mxu1 %v2077_v61 }
 0x638   :  { %2080 = vmatpush3.bf16.msra.mxu1 %v2077_v61 }
 0x639   :  { %2082 = vmatprep.subr.bf16.mxu1 %v2081_v8 }
 0x63c   :  { %2084 = vmatpush3.bf16.msra.mxu1 %v2081_v8 }
 0x63e   :  { %v1139_v63 = vpop.f32.mrb[10].mxu0 }
 0x63f   :  { %v1140_v0 = vadd.f32 %v1494_v62, %v1139_v63  ;;  %v1141_v1 = vpop.f32.mrb[11].mxu0 }
 0x641   :  { %v1233_v2 = vsub.f32 0.0, %v1140_v0  ;;  %1145 = vst.msk [vmem:[#allocation2] sm:$0x3] %vm1144_vm7, %v1140_v0 }
 0x643   :  { %v1234_v7 = vmul.f32 1.442695, %v1233_v2 }
 0x645   :  { %2090 = vpow2.f32 %v1234_v7 }
 0x64f   :  { %v2091_v9 = vpop.eup %2090 }
 0x650   :  { %1237 = vrot.lane.b32.xlu0 %v2091_v9, %s2119_s18 }
 0x6c2   :  { %v1238_v10 = vpop.permute.xlu0 %1237 }
 0x6c3   :  { %v1241_v11 = vsel %vm1240_vm8, %v2091_v9, %v1238_v10 }
 0x6c4   :  { %v1253_v14 = vrot.slane %v1241_v11, %v2674_v16  ;;  %v1265_v28 = vrot.slane %v1241_v11, %v2680_v18 }
 0x6c6   :  { %v1254_v19 = vmul.f32 %v1253_v14, %v1242_v12  ;;  %v1255_v20 = vmul.f32 %v1253_v14, %v1243_v13  ;;  %v1256_v21 = vmul.f32 %v1253_v14, %v1244_v17  ;;  %v1257_v24 = vmul.f32 %v1253_v14, %v1245_v22 }
 0x6c7   :  { %v1258_v16 = vmul.f32 %v1253_v14, %v1246_v23  ;;  %v1259_v27 = vmul.f32 %v1253_v14, %v1247_v25  ;;  %v1260_v29 = vmul.f32 %v1253_v14, %v1248_v26  ;;  %v1261_v31 = vmul.f32 %v1253_v14, %v1249_v30 }
 0x6c8   :  { %1716 = vmatprep.mubr.f32.mxu1 %v1254_v19  ;;  %v1266_v32 = vmul.f32 %v1265_v28, %v1242_v12  ;;  %v1267_v15 = vmul.f32 %v1265_v28, %v1243_v13  ;;  %v1268_v33 = vmul.f32 %v1265_v28, %v1244_v17  ;;  %v1269_v34 = vmul.f32 %v1265_v28, %v1245_v22 }
 0x6c9   :  { %1717 = vmatmul.mubr.f32.vlgmr.msra.gmra.mrb[10].mxu1 %v1255_v20  ;;  %v1270_v35 = vmul.f32 %v1265_v28, %v1246_v23  ;;  %v1271_v18 = vmul.f32 %v1265_v28, %v1247_v25  ;;  %v1272_v36 = vmul.f32 %v1265_v28, %v1248_v26  ;;  %v1273_v37 = vmul.f32 %v1265_v28, %v1249_v30 }
 0x6ca   :  { %1719 = vmatprep.mubr.f32.mxu1 %v1256_v21 }
 0x6cd   :  { %1720 = vmatmul.mubr.f32.gmra.mrb[12].mxu1 %v1257_v24 }
 0x6ce   :  { %1722 = vmatprep.mubr.f32.mxu1 %v1258_v16 }
 0x6d1   :  { %1723 = vmatmul.mubr.f32.gmra.mrb[14].mxu1 %v1259_v27 }
 0x6d2   :  { %1725 = vmatprep.mubr.f32.mxu1 %v1260_v29 }
 0x6d5   :  { %1726 = vmatmul.mubr.f32.gmra.mrb[16].mxu1 %v1261_v31 }
 0x6d6   :  { %1728 = vmatprep.mubr.f32.mxu1 %v1266_v32 }
 0x6d9   :  { %1729 = vmatmul.mubr.f32.gmra.mrb[18].mxu1 %v1267_v15 }
 0x6da   :  { %1731 = vmatprep.mubr.f32.mxu1 %v1268_v33 }
 0x6dd   :  { %1732 = vmatmul.mubr.f32.gmra.mrb[20].mxu1 %v1269_v34 }
 0x6de   :  { %1734 = vmatprep.mubr.f32.mxu1 %v1270_v35 }
 0x6e1   :  { %1735 = vmatmul.mubr.f32.gmra.mrb[22].mxu1 %v1271_v18 }
 0x6e2   :  { %1737 = vmatprep.mubr.f32.mxu1 %v1272_v36 }
 0x6e5   :  { %1738 = vmatmul.mubr.f32.gmra.mrb[24].mxu1 %v1273_v37 }
 0x6f2   :  { %v1228_v38 = vpop.f32.mrb[8].mxu1 }
 0x6f3   :  { %1232 = vst [vmem:[%s3338_s23] sm:$0x3] %v1228_v38  ;;  %v1683_v3 = vpop.f32.mrb[9].mxu1 }
 0x6f4   :  { %2103 = shalt.err (!%p2100_p4)
}
 0x6f5   :  { %s2104_s7 = scalar_lea.hbm %s3337_s22, 32 }
 0x6f6   :  { %p2105_p5 = scmp.ne.s32.totalorder %s3337_s22, %s2104_s7  ;;  %p2108_p6 = scmp.lt.u32.totalorder %s2104_s7, %s3337_s22 }
 0x6f8   :  { %p2110_p7 = pnand %p2108_p6, %p2105_p5 }
 0x6fa   :  { %2113 = shalt.err (!%p2110_p7)
}
 0x6fb   :  { %1466 = dma.vmem_to_hbm [thread:$0]  %s1464_s29, 32, %s3337_s22, [#allocation3]  }
 0x79c   :  { %v1718_v6 = vpop.f32.mrb[10].mxu1 }
 0x79d   :  { %1436 = vst [vmem:[%s3339_s24 + $0x8] sm:$0xff] %v1718_v6  ;;  %v1356_v39 = vpop.f32.mrb[11].mxu1 }
 0x79e   :  { %1435 = vst [vmem:[%s3339_s24] sm:$0xff] %v1356_v39 }
 0x7a0   :  { %v1721_v40 = vpop.f32.mrb[12].mxu1 }
 0x7a1   :  { %1438 = vst [vmem:[%s3339_s24 + $0x18] sm:$0xff] %v1721_v40  ;;  %v1366_v41 = vpop.f32.mrb[13].mxu1 }
 0x7a2   :  { %1437 = vst [vmem:[%s3339_s24 + $0x10] sm:$0xff] %v1366_v41 }
 0x7a4   :  { %v1724_v42 = vpop.f32.mrb[14].mxu1 }
 0x7a5   :  { %1440 = vst [vmem:[%s3339_s24 + $0x28] sm:$0xff] %v1724_v42  ;;  %v1376_v43 = vpop.f32.mrb[15].mxu1 }
 0x7a6   :  { %1439 = vst [vmem:[%s3339_s24 + $0x20] sm:$0xff] %v1376_v43 }
 0x7a8   :  { %v1727_v44 = vpop.f32.mrb[16].mxu1 }
 0x7a9   :  { %1442 = vst [vmem:[%s3339_s24 + $0x38] sm:$0xff] %v1727_v44  ;;  %v1386_v45 = vpop.f32.mrb[17].mxu1 }
 0x7aa   :  { %1441 = vst [vmem:[%s3339_s24 + $0x30] sm:$0xff] %v1386_v45 }
 0x7ac   :  { %v1730_v46 = vpop.f32.mrb[18].mxu1 }
 0x7ad   :  { %1444 = vst [vmem:[%s3339_s24 + $0x48] sm:$0xff] %v1730_v46  ;;  %v1396_v47 = vpop.f32.mrb[19].mxu1 }
 0x7ae   :  { %1443 = vst [vmem:[%s3339_s24 + $0x40] sm:$0xff] %v1396_v47 }
 0x7b0   :  { %v1733_v48 = vpop.f32.mrb[20].mxu1 }
 0x7b1   :  { %1446 = vst [vmem:[%s3339_s24 + $0x58] sm:$0xff] %v1733_v48  ;;  %v1406_v49 = vpop.f32.mrb[21].mxu1 }
 0x7b2   :  { %1445 = vst [vmem:[%s3339_s24 + $0x50] sm:$0xff] %v1406_v49 }
 0x7b4   :  { %v1736_v50 = vpop.f32.mrb[22].mxu1 }
 0x7b5   :  { %1448 = vst [vmem:[%s3339_s24 + $0x68] sm:$0xff] %v1736_v50  ;;  %v1416_v51 = vpop.f32.mrb[23].mxu1 }
 0x7b6   :  { %1447 = vst [vmem:[%s3339_s24 + $0x60] sm:$0xff] %v1416_v51 }
 0x7b8   :  { %v1739_v52 = vpop.f32.mrb[24].mxu1 }
 0x7b9   :  { %1450 = vst [vmem:[%s3339_s24 + $0x78] sm:$0xff] %v1739_v52  ;;  %v1426_v53 = vpop.f32.mrb[25].mxu1 }
 0x7ba   :  { %1449 = vst [vmem:[%s3339_s24 + $0x70] sm:$0xff] %v1426_v53 }
 0x7bb   :  { %2114 = dma.done.wait [#allocation3], 32  }
 0x7bc   :  { %2115 = vsyncadd [#allocation3], 4294967264 }
 0x7bd   :  { %1484 = vsyncpa [#allocation3], 1 }

</bundles_post_ra>
